<compile_context>
chip_gen: v7x
topology: tpu7x:2x2x1
jax: 0.10.0
libtpu: 0.0.40
codegen_flags: <defaults>
</compile_context>

<pallas_src>
import jax
import jax.numpy as jnp
from jax import lax
from jax.experimental import pallas as pl
from jax.experimental.pallas import tpu as pltpu

EMB = 30          # embedding dim
HID = 20          # LSTM hidden size per direction
HP = 32           # per-direction hidden, padded to 32 lanes
HCAT = 2 * HP     # fused carry width  [bfs | dfs]            = 64
ECAT = 2 * HP     # fused input width  [x_bfs pad | x_dfs pad] = 64
GCAT = 4 * HCAT   # fused gate width   [i | f | g | o] * 64    = 256
FC1P = 128        # fc1 width 60 padded to 128 lanes
FC2P = 128        # fc2 width 1 padded to 128 lanes (lane-dense final store)


def bilstm_kernel(xcat_ref, lens_ref, wih_ref, whh_ref, b_ref,
                  w1_ref, b1_ref, w2_ref, b2_ref, out_ref, xg_ref):
    T, TB, _ = xcat_ref.shape
    G4 = GCAT // 4  # 64-lane gate chunk (both directions)

    # ---- hoisted input projection: one MXU matmul for all T steps and both
    #      LSTM directions (block-diagonal packed weights), stored in scratch.
    xflat = xcat_ref[...].reshape(T * TB, ECAT)
    xg = jnp.dot(xflat, wih_ref[...], preferred_element_type=jnp.float32) + b_ref[...]
    xg_ref[...] = xg.reshape(T, TB, GCAT)

    lens = lens_ref[...]  # (TB, HCAT) int32: per-lane sequence lengths (bfs|dfs)

    def step(t, carry):
        h, c = carry  # (TB, HCAT) each, both directions fused
        g = xg_ref[t] + jnp.dot(h, whh_ref[...], preferred_element_type=jnp.float32)
        i_g = jax.nn.sigmoid(g[:, 0 * G4:1 * G4])
        f_g = jax.nn.sigmoid(g[:, 1 * G4:2 * G4])
        g_g = jnp.tanh(g[:, 2 * G4:3 * G4])
        o_g = jax.nn.sigmoid(g[:, 3 * G4:4 * G4])
        c_new = f_g * c + i_g * g_g
        h_new = o_g * jnp.tanh(c_new)
        # Freeze state once past each sequence's length (== pack_padded_sequence
        # + gather at lengths-1 in the torch code).
        valid = t < lens
        h = jnp.where(valid, h_new, h)
        c = jnp.where(valid, c_new, c)
        return h, c

    h0 = jnp.zeros((TB, HCAT), jnp.float32)
    c0 = jnp.zeros((TB, HCAT), jnp.float32)
    h_last, _ = lax.fori_loop(0, T, step, (h0, c0), unroll=True)

    # ---- MLP head: lane-dense padded fc1/fc2; final store is a full-width,
    #      unmasked lane-dense vst (column 0 is the real logit).
    z1 = jnp.dot(h_last, w1_ref[...], preferred_element_type=jnp.float32) + b1_ref[...]
    z1 = jnp.maximum(z1, 0.0)
    z2 = jnp.dot(z1, w2_ref[...], preferred_element_type=jnp.float32) + b2_ref[...]
    out_ref[...] = jax.nn.sigmoid(z2)


def _pack_params(params):
    """Pack per-direction LSTM / MLP weights into lane-dense block-diagonal mats."""
    wih = jnp.zeros((ECAT, GCAT), jnp.float32)
    whh = jnp.zeros((HCAT, GCAT), jnp.float32)
    bias = jnp.zeros((1, GCAT), jnp.float32)
    for g in range(4):                       # torch gate order i, f, g, o
        cb = g * (GCAT // 4)                 # bfs gate columns start
        cd = cb + HP                         # dfs gate columns start
        sl = slice(g * HID, (g + 1) * HID)
        wih = wih.at[0:EMB, cb:cb + HID].set(params["wih_b"][:, sl])
        wih = wih.at[HP:HP + EMB, cd:cd + HID].set(params["wih_d"][:, sl])
        whh = whh.at[0:HID, cb:cb + HID].set(params["whh_b"][:, sl])
        whh = whh.at[HP:HP + HID, cd:cd + HID].set(params["whh_d"][:, sl])
        bias = bias.at[0, cb:cb + HID].set(params["b_b"][0, sl])
        bias = bias.at[0, cd:cd + HID].set(params["b_d"][0, sl])
    w1 = jnp.zeros((HCAT, FC1P), jnp.float32)
    w1 = w1.at[0:HID, 0:60].set(params["w1"][0:HID, :])
    w1 = w1.at[HP:HP + HID, 0:60].set(params["w1"][HID:2 * HID, :])
    b1 = jnp.zeros((1, FC1P), jnp.float32).at[0, 0:60].set(params["b1"][0])
    w2 = jnp.zeros((FC1P, FC2P), jnp.float32).at[0:60, 0:1].set(params["w2"])
    b2 = jnp.zeros((1, FC2P), jnp.float32).at[0:1, 0:1].set(params["b2"])
    return wih, whh, bias, w1, b1, w2, b2


def bilstm_forward(bfs, dfs, params):
    """bfs, dfs: int32 (B, T) padded with 0. Returns (B, 1) float32."""
    B, T = bfs.shape

    # ---- batch padding / tiling --------------------------------------------
    Bp = max(8, -(-B // 8) * 8)          # pad batch to f32 sublane multiple
    TB = min(Bp, 128)                    # batch tile per grid step
    Bp = -(-Bp // TB) * TB
    nb = Bp // TB

    pad = Bp - B
    bfs_p = jnp.pad(bfs, ((0, pad), (0, 0)))
    dfs_p = jnp.pad(dfs, ((0, pad), (0, 0)))

    bfs_len = (bfs_p != 0).sum(axis=1).astype(jnp.int32)
    dfs_len = (dfs_p != 0).sum(axis=1).astype(jnp.int32)
    lens_cat = jnp.concatenate(
        [jnp.broadcast_to(bfs_len[:, None], (Bp, HP)),
         jnp.broadcast_to(dfs_len[:, None], (Bp, HP))], axis=1)  # (Bp, 64)

    # ---- embedding gather (plain-JAX glue) + lane-dense time-major packing --
    emb_b = jnp.transpose(params["bfs_emb_table"][bfs_p], (1, 0, 2)).astype(jnp.float32)
    emb_d = jnp.transpose(params["dfs_emb_table"][dfs_p], (1, 0, 2)).astype(jnp.float32)
    x_cat = jnp.zeros((T, Bp, ECAT), jnp.float32)
    x_cat = x_cat.at[:, :, 0:EMB].set(emb_b)
    x_cat = x_cat.at[:, :, HP:HP + EMB].set(emb_d)

    wih, whh, bias, w1, b1, w2, b2 = _pack_params(params)

    def full(shape):
        return pl.BlockSpec(shape, lambda i, _r=len(shape): (0,) * _r)

    out = pl.pallas_call(
        bilstm_kernel,
        out_shape=jax.ShapeDtypeStruct((Bp, FC2P), jnp.float32),
        grid=(nb,),
        in_specs=[
            pl.BlockSpec((T, TB, ECAT), lambda i: (0, i, 0)),   # streamed emb slab
            pl.BlockSpec((TB, HCAT), lambda i: (i, 0)),         # per-lane lengths
            full((ECAT, GCAT)),   # wih (block-diag, both dirs)
            full((HCAT, GCAT)),   # whh (block-diag, both dirs)
            full((1, GCAT)),      # folded bias
            full((HCAT, FC1P)),   # fc1 weight (padded)
            full((1, FC1P)),      # fc1 bias (padded)
            full((FC1P, FC2P)),   # fc2 weight (padded, lane-dense out)
            full((1, FC2P)),      # fc2 bias (padded)
        ],
        out_specs=pl.BlockSpec((TB, FC2P), lambda i: (i, 0)),
        scratch_shapes=[pltpu.VMEM((T, TB, GCAT), jnp.float32)],
        compiler_params=pltpu.CompilerParams(
            dimension_semantics=("parallel",)),
    )(x_cat, lens_cat, wih, whh, bias, w1, b1, w2, b2)
    return out[:B, :1]


def bilstm_reference(bfs, dfs, params):
    """Pure-JAX reference mirroring the PyTorch forward semantics."""
    B, T = bfs.shape
    H = HID

    def run_lstm(tokens, table, wih, whh, b):
        lengths = (tokens != 0).sum(axis=1).astype(jnp.int32)
        emb = table[tokens]
        h = jnp.zeros((B, H), jnp.float32)
        c = jnp.zeros((B, H), jnp.float32)
        for t in range(T):
            x_t = emb[:, t, :].astype(jnp.float32)
            gates = x_t @ wih + h @ whh + b
            i_g = jax.nn.sigmoid(gates[:, 0:H])
            f_g = jax.nn.sigmoid(gates[:, H:2 * H])
            g_g = jnp.tanh(gates[:, 2 * H:3 * H])
            o_g = jax.nn.sigmoid(gates[:, 3 * H:4 * H])
            c_new = f_g * c + i_g * g_g
            h_new = o_g * jnp.tanh(c_new)
            valid = (t < lengths).reshape(B, 1)
            h = jnp.where(valid, h_new, h)
            c = jnp.where(valid, c_new, c)
        return h

    h_bfs = run_lstm(bfs, params["bfs_emb_table"], params["wih_b"], params["whh_b"], params["b_b"])
    h_dfs = run_lstm(dfs, params["dfs_emb_table"], params["wih_d"], params["whh_d"], params["b_d"])
    merged = jnp.concatenate([h_bfs, h_dfs], axis=1)
    z1 = jnp.maximum(merged @ params["w1"] + params["b1"], 0.0)
    z2 = z1 @ params["w2"] + params["b2"]
    return jax.nn.sigmoid(z2)


def init_params(key, vocab_size):
    ks = jax.random.split(key, 12)
    s = 1.0 / jnp.sqrt(jnp.float32(HID))
    u = lambda k, shape, scale: jax.random.uniform(k, shape, jnp.float32, -scale, scale)
    return {
        "bfs_emb_table": jax.random.normal(ks[0], (vocab_size, EMB), jnp.float32),
        "dfs_emb_table": jax.random.normal(ks[1], (vocab_size, EMB), jnp.float32),
        # LSTM weights stored transposed for right-multiplication; gate order i,f,g,o.
        "wih_b": u(ks[2], (EMB, 4 * HID), s),
        "whh_b": u(ks[3], (HID, 4 * HID), s),
        "b_b":   u(ks[4], (1, 4 * HID), s),   # = b_ih + b_hh folded together
        "wih_d": u(ks[5], (EMB, 4 * HID), s),
        "whh_d": u(ks[6], (HID, 4 * HID), s),
        "b_d":   u(ks[7], (1, 4 * HID), s),
        "w1":    u(ks[8], (2 * HID, 60), 1.0 / jnp.sqrt(40.0)),
        "b1":    u(ks[9], (1, 60), 1.0 / jnp.sqrt(40.0)),
        "w2":    u(ks[10], (60, 1), 1.0 / jnp.sqrt(60.0)),
        "b2":    u(ks[11], (1, 1), 1.0 / jnp.sqrt(60.0)),
    }


if __name__ == "__main__":
    key = jax.random.PRNGKey(0)
    vocab_size = 50
    B, T = 2, 8

    k_p, k_b, k_d = jax.random.split(key, 3)
    params = init_params(k_p, vocab_size)

    # Padded token sequences (trailing zeros = padding), lengths >= 1.
    bfs_tokens = jax.random.randint(k_b, (B, T), 1, vocab_size, dtype=jnp.int32)
    dfs_tokens = jax.random.randint(k_d, (B, T), 1, vocab_size, dtype=jnp.int32)
    bfs_tokens = bfs_tokens.at[0, 5:].set(0).at[1, 7:].set(0)   # lengths: 5, 7
    dfs_tokens = dfs_tokens.at[0, 6:].set(0).at[1, 3:].set(0)   # lengths: 6, 3

    out = bilstm_forward(bfs_tokens, dfs_tokens, params)
    out = jax.block_until_ready(out)

    ref = bilstm_reference(bfs_tokens, dfs_tokens, params)
    assert out.shape == (B, 1)
    assert jnp.allclose(out, ref, rtol=1e-4, atol=1e-5), (out, ref)

    print("KERNEL_OK")
</pallas_src>

<mosaic_0001>
module attributes {stable_mosaic.version = 11 : i64} {
  func.func @bilstm_kernel(%arg0: i32, %arg1: memref<8x8x64xf32, #tpu.memory_space<vmem>>, %arg2: memref<8x64xi32, #tpu.memory_space<vmem>>, %arg3: memref<64x256xf32, #tpu.memory_space<vmem>>, %arg4: memref<64x256xf32, #tpu.memory_space<vmem>>, %arg5: memref<1x256xf32, #tpu.memory_space<vmem>>, %arg6: memref<64x128xf32, #tpu.memory_space<vmem>>, %arg7: memref<1x128xf32, #tpu.memory_space<vmem>>, %arg8: memref<128x128xf32, #tpu.memory_space<vmem>>, %arg9: memref<1x128xf32, #tpu.memory_space<vmem>>, %arg10: memref<8x128xf32, #tpu.memory_space<vmem>>, %arg11: memref<8x8x256xf32, #tpu.memory_space<vmem>>) attributes {dimension_semantics = [#tpu.dimension_semantics<parallel>], iteration_bounds = array<i64: 1>, scalar_prefetch = 0 : i64, scratch_operands = 1 : i64, tpu.core_type = #tpu.core_type<tc>, window_params = [{transform_indices = @transform_0, window_bounds = array<i64: 8, 8, 64>}, {transform_indices = @transform_1, window_bounds = array<i64: 8, 64>}, {pipeline_mode = #tpu.pipeline_mode<synchronous>, transform_indices = @transform_2, window_bounds = array<i64: 64, 256>}, {pipeline_mode = #tpu.pipeline_mode<synchronous>, transform_indices = @transform_3, window_bounds = array<i64: 64, 256>}, {pipeline_mode = #tpu.pipeline_mode<synchronous>, transform_indices = @transform_4, window_bounds = array<i64: 1, 256>}, {pipeline_mode = #tpu.pipeline_mode<synchronous>, transform_indices = @transform_5, window_bounds = array<i64: 64, 128>}, {pipeline_mode = #tpu.pipeline_mode<synchronous>, transform_indices = @transform_6, window_bounds = array<i64: 1, 128>}, {pipeline_mode = #tpu.pipeline_mode<synchronous>, transform_indices = @transform_7, window_bounds = array<i64: 128, 128>}, {pipeline_mode = #tpu.pipeline_mode<synchronous>, transform_indices = @transform_8, window_bounds = array<i64: 1, 128>}, {transform_indices = @transform_9, window_bounds = array<i64: 8, 128>}]} {
    %c0 = arith.constant 0 : index
    %c0_0 = arith.constant 0 : index
    %c0_1 = arith.constant 0 : index
    %0 = vector.load %arg1[%c0, %c0_0, %c0_1] : memref<8x8x64xf32, #tpu.memory_space<vmem>>, vector<8x8x64xf32>
    %1 = vector.shape_cast %0 : vector<8x8x64xf32> to vector<64x64xf32>
    %c0_2 = arith.constant 0 : index
    %c0_3 = arith.constant 0 : index
    %2 = vector.load %arg3[%c0_2, %c0_3] : memref<64x256xf32, #tpu.memory_space<vmem>>, vector<64x256xf32>
    %cst = arith.constant dense<0.000000e+00> : vector<64x256xf32>
    %3 = tpu.matmul %1, %2, %cst {dimension_numbers = #tpu.dot_dimension_numbers<[1], [0], [0], [1], [0, 0, 1, 1], [], []>} : vector<64x64xf32>, vector<64x256xf32>, vector<64x256xf32> -> vector<64x256xf32>
    %c0_4 = arith.constant 0 : index
    %c0_5 = arith.constant 0 : index
    %4 = vector.load %arg5[%c0_4, %c0_5] : memref<1x256xf32, #tpu.memory_space<vmem>>, vector<1x256xf32>
    %5 = vector.broadcast %4 : vector<1x256xf32> to vector<64x256xf32>
    %6 = arith.addf %3, %5 : vector<64x256xf32>
    %7 = vector.shape_cast %6 : vector<64x256xf32> to vector<8x8x256xf32>
    %c0_6 = arith.constant 0 : index
    %c0_7 = arith.constant 0 : index
    %c0_8 = arith.constant 0 : index
    %8 = vector.load %arg11[%c0_6, %c0_7, %c0_8] : memref<8x8x256xf32, #tpu.memory_space<vmem>>, vector<8x8x256xf32>
    tpu.vector_store %arg11[%c0_6, %c0_7, %c0_8], %7 {strides = array<i32>} : memref<8x8x256xf32, #tpu.memory_space<vmem>>, vector<8x8x256xf32>,
    %c0_9 = arith.constant 0 : index
    %c0_10 = arith.constant 0 : index
    %9 = vector.load %arg2[%c0_9, %c0_10] : memref<8x64xi32, #tpu.memory_space<vmem>>, vector<8x64xi32>
    %cst_11 = arith.constant 0.000000e+00 : f32
    %10 = vector.broadcast %cst_11 : f32 to vector<8x64xf32>
    %cst_12 = arith.constant 0.000000e+00 : f32
    %11 = vector.broadcast %cst_12 : f32 to vector<8x64xf32>
    %c0_i32 = arith.constant 0 : i32
    %12 = arith.index_cast %c0_i32 : i32 to index
    %c0_13 = arith.constant 0 : index
    %c0_14 = arith.constant 0 : index
    %13 = vector.load %arg11[%12, %c0_13, %c0_14] : memref<8x8x256xf32, #tpu.memory_space<vmem>>, vector<1x8x256xf32>
    %14 = vector.shape_cast %13 : vector<1x8x256xf32> to vector<8x256xf32>
    %c0_15 = arith.constant 0 : index
    %c0_16 = arith.constant 0 : index
    %15 = vector.load %arg4[%c0_15, %c0_16] : memref<64x256xf32, #tpu.memory_space<vmem>>, vector<64x256xf32>
    %cst_17 = arith.constant dense<0.000000e+00> : vector<8x256xf32>
    %16 = tpu.matmul %10, %15, %cst_17 {dimension_numbers = #tpu.dot_dimension_numbers<[1], [0], [0], [1], [0, 0, 1, 1], [], []>} : vector<8x64xf32>, vector<64x256xf32>, vector<8x256xf32> -> vector<8x256xf32>
    %17 = arith.addf %14, %16 : vector<8x256xf32>
    %18 = vector.extract_strided_slice %17 {offsets = [0, 0], sizes = [8, 64], strides = [1, 1]} : vector<8x256xf32> to vector<8x64xf32>
    %19 = arith.negf %18 : vector<8x64xf32>
    %20 = math.exp %19 : vector<8x64xf32>
    %cst_18 = arith.constant 1.000000e+00 : f32
    %21 = vector.broadcast %cst_18 : f32 to vector<8x64xf32>
    %22 = arith.addf %21, %20 : vector<8x64xf32>
    %23 = arith.divf %21, %22 : vector<8x64xf32>
    %24 = vector.extract_strided_slice %17 {offsets = [0, 64], sizes = [8, 64], strides = [1, 1]} : vector<8x256xf32> to vector<8x64xf32>
    %25 = arith.negf %24 : vector<8x64xf32>
    %26 = math.exp %25 : vector<8x64xf32>
    %cst_19 = arith.constant 1.000000e+00 : f32
    %27 = vector.broadcast %cst_19 : f32 to vector<8x64xf32>
    %28 = arith.addf %27, %26 : vector<8x64xf32>
    %29 = arith.divf %27, %28 : vector<8x64xf32>
    %30 = vector.extract_strided_slice %17 {offsets = [0, 128], sizes = [8, 64], strides = [1, 1]} : vector<8x256xf32> to vector<8x64xf32>
    %31 = math.tanh %30 : vector<8x64xf32>
    %32 = vector.extract_strided_slice %17 {offsets = [0, 192], sizes = [8, 64], strides = [1, 1]} : vector<8x256xf32> to vector<8x64xf32>
    %33 = arith.negf %32 : vector<8x64xf32>
    %34 = math.exp %33 : vector<8x64xf32>
    %cst_20 = arith.constant 1.000000e+00 : f32
    %35 = vector.broadcast %cst_20 : f32 to vector<8x64xf32>
    %36 = arith.addf %35, %34 : vector<8x64xf32>
    %37 = arith.divf %35, %36 : vector<8x64xf32>
    %38 = arith.mulf %29, %11 : vector<8x64xf32>
    %39 = arith.mulf %23, %31 : vector<8x64xf32>
    %40 = arith.addf %38, %39 : vector<8x64xf32>
    %41 = math.tanh %40 : vector<8x64xf32>
    %42 = arith.mulf %37, %41 : vector<8x64xf32>
    %43 = vector.broadcast %c0_i32 : i32 to vector<8x64xi32>
    %44 = arith.cmpi slt, %43, %9 : vector<8x64xi32>
    %45 = arith.select %44, %42, %10 : vector<8x64xi1>, vector<8x64xf32>
    %46 = arith.select %44, %40, %11 : vector<8x64xi1>, vector<8x64xf32>
    %c1_i32 = arith.constant 1 : i32
    %47 = arith.index_cast %c1_i32 : i32 to index
    %c0_21 = arith.constant 0 : index
    %c0_22 = arith.constant 0 : index
    %48 = vector.load %arg11[%47, %c0_21, %c0_22] : memref<8x8x256xf32, #tpu.memory_space<vmem>>, vector<1x8x256xf32>
    %49 = vector.shape_cast %48 : vector<1x8x256xf32> to vector<8x256xf32>
    %c0_23 = arith.constant 0 : index
    %c0_24 = arith.constant 0 : index
    %50 = vector.load %arg4[%c0_23, %c0_24] : memref<64x256xf32, #tpu.memory_space<vmem>>, vector<64x256xf32>
    %cst_25 = arith.constant dense<0.000000e+00> : vector<8x256xf32>
    %51 = tpu.matmul %45, %50, %cst_25 {dimension_numbers = #tpu.dot_dimension_numbers<[1], [0], [0], [1], [0, 0, 1, 1], [], []>} : vector<8x64xf32>, vector<64x256xf32>, vector<8x256xf32> -> vector<8x256xf32>
    %52 = arith.addf %49, %51 : vector<8x256xf32>
    %53 = vector.extract_strided_slice %52 {offsets = [0, 0], sizes = [8, 64], strides = [1, 1]} : vector<8x256xf32> to vector<8x64xf32>
    %54 = arith.negf %53 : vector<8x64xf32>
    %55 = math.exp %54 : vector<8x64xf32>
    %cst_26 = arith.constant 1.000000e+00 : f32
    %56 = vector.broadcast %cst_26 : f32 to vector<8x64xf32>
    %57 = arith.addf %56, %55 : vector<8x64xf32>
    %58 = arith.divf %56, %57 : vector<8x64xf32>
    %59 = vector.extract_strided_slice %52 {offsets = [0, 64], sizes = [8, 64], strides = [1, 1]} : vector<8x256xf32> to vector<8x64xf32>
    %60 = arith.negf %59 : vector<8x64xf32>
    %61 = math.exp %60 : vector<8x64xf32>
    %cst_27 = arith.constant 1.000000e+00 : f32
    %62 = vector.broadcast %cst_27 : f32 to vector<8x64xf32>
    %63 = arith.addf %62, %61 : vector<8x64xf32>
    %64 = arith.divf %62, %63 : vector<8x64xf32>
    %65 = vector.extract_strided_slice %52 {offsets = [0, 128], sizes = [8, 64], strides = [1, 1]} : vector<8x256xf32> to vector<8x64xf32>
    %66 = math.tanh %65 : vector<8x64xf32>
    %67 = vector.extract_strided_slice %52 {offsets = [0, 192], sizes = [8, 64], strides = [1, 1]} : vector<8x256xf32> to vector<8x64xf32>
    %68 = arith.negf %67 : vector<8x64xf32>
    %69 = math.exp %68 : vector<8x64xf32>
    %cst_28 = arith.constant 1.000000e+00 : f32
    %70 = vector.broadcast %cst_28 : f32 to vector<8x64xf32>
    %71 = arith.addf %70, %69 : vector<8x64xf32>
    %72 = arith.divf %70, %71 : vector<8x64xf32>
    %73 = arith.mulf %64, %46 : vector<8x64xf32>
    %74 = arith.mulf %58, %66 : vector<8x64xf32>
    %75 = arith.addf %73, %74 : vector<8x64xf32>
    %76 = math.tanh %75 : vector<8x64xf32>
    %77 = arith.mulf %72, %76 : vector<8x64xf32>
    %78 = vector.broadcast %c1_i32 : i32 to vector<8x64xi32>
    %79 = arith.cmpi slt, %78, %9 : vector<8x64xi32>
    %80 = arith.select %79, %77, %45 : vector<8x64xi1>, vector<8x64xf32>
    %81 = arith.select %79, %75, %46 : vector<8x64xi1>, vector<8x64xf32>
    %c2_i32 = arith.constant 2 : i32
    %82 = arith.index_cast %c2_i32 : i32 to index
    %c0_29 = arith.constant 0 : index
    %c0_30 = arith.constant 0 : index
    %83 = vector.load %arg11[%82, %c0_29, %c0_30] : memref<8x8x256xf32, #tpu.memory_space<vmem>>, vector<1x8x256xf32>
    %84 = vector.shape_cast %83 : vector<1x8x256xf32> to vector<8x256xf32>
    %c0_31 = arith.constant 0 : index
    %c0_32 = arith.constant 0 : index
    %85 = vector.load %arg4[%c0_31, %c0_32] : memref<64x256xf32, #tpu.memory_space<vmem>>, vector<64x256xf32>
    %cst_33 = arith.constant dense<0.000000e+00> : vector<8x256xf32>
    %86 = tpu.matmul %80, %85, %cst_33 {dimension_numbers = #tpu.dot_dimension_numbers<[1], [0], [0], [1], [0, 0, 1, 1], [], []>} : vector<8x64xf32>, vector<64x256xf32>, vector<8x256xf32> -> vector<8x256xf32>
    %87 = arith.addf %84, %86 : vector<8x256xf32>
    %88 = vector.extract_strided_slice %87 {offsets = [0, 0], sizes = [8, 64], strides = [1, 1]} : vector<8x256xf32> to vector<8x64xf32>
    %89 = arith.negf %88 : vector<8x64xf32>
    %90 = math.exp %89 : vector<8x64xf32>
    %cst_34 = arith.constant 1.000000e+00 : f32
    %91 = vector.broadcast %cst_34 : f32 to vector<8x64xf32>
    %92 = arith.addf %91, %90 : vector<8x64xf32>
    %93 = arith.divf %91, %92 : vector<8x64xf32>
    %94 = vector.extract_strided_slice %87 {offsets = [0, 64], sizes = [8, 64], strides = [1, 1]} : vector<8x256xf32> to vector<8x64xf32>
    %95 = arith.negf %94 : vector<8x64xf32>
    %96 = math.exp %95 : vector<8x64xf32>
    %cst_35 = arith.constant 1.000000e+00 : f32
    %97 = vector.broadcast %cst_35 : f32 to vector<8x64xf32>
    %98 = arith.addf %97, %96 : vector<8x64xf32>
    %99 = arith.divf %97, %98 : vector<8x64xf32>
    %100 = vector.extract_strided_slice %87 {offsets = [0, 128], sizes = [8, 64], strides = [1, 1]} : vector<8x256xf32> to vector<8x64xf32>
    %101 = math.tanh %100 : vector<8x64xf32>
    %102 = vector.extract_strided_slice %87 {offsets = [0, 192], sizes = [8, 64], strides = [1, 1]} : vector<8x256xf32> to vector<8x64xf32>
    %103 = arith.negf %102 : vector<8x64xf32>
    %104 = math.exp %103 : vector<8x64xf32>
    %cst_36 = arith.constant 1.000000e+00 : f32
    %105 = vector.broadcast %cst_36 : f32 to vector<8x64xf32>
    %106 = arith.addf %105, %104 : vector<8x64xf32>
    %107 = arith.divf %105, %106 : vector<8x64xf32>
    %108 = arith.mulf %99, %81 : vector<8x64xf32>
    %109 = arith.mulf %93, %101 : vector<8x64xf32>
    %110 = arith.addf %108, %109 : vector<8x64xf32>
    %111 = math.tanh %110 : vector<8x64xf32>
    %112 = arith.mulf %107, %111 : vector<8x64xf32>
    %113 = vector.broadcast %c2_i32 : i32 to vector<8x64xi32>
    %114 = arith.cmpi slt, %113, %9 : vector<8x64xi32>
    %115 = arith.select %114, %112, %80 : vector<8x64xi1>, vector<8x64xf32>
    %116 = arith.select %114, %110, %81 : vector<8x64xi1>, vector<8x64xf32>
    %c3_i32 = arith.constant 3 : i32
    %117 = arith.index_cast %c3_i32 : i32 to index
    %c0_37 = arith.constant 0 : index
    %c0_38 = arith.constant 0 : index
    %118 = vector.load %arg11[%117, %c0_37, %c0_38] : memref<8x8x256xf32, #tpu.memory_space<vmem>>, vector<1x8x256xf32>
    %119 = vector.shape_cast %118 : vector<1x8x256xf32> to vector<8x256xf32>
    %c0_39 = arith.constant 0 : index
    %c0_40 = arith.constant 0 : index
    %120 = vector.load %arg4[%c0_39, %c0_40] : memref<64x256xf32, #tpu.memory_space<vmem>>, vector<64x256xf32>
    %cst_41 = arith.constant dense<0.000000e+00> : vector<8x256xf32>
    %121 = tpu.matmul %115, %120, %cst_41 {dimension_numbers = #tpu.dot_dimension_numbers<[1], [0], [0], [1], [0, 0, 1, 1], [], []>} : vector<8x64xf32>, vector<64x256xf32>, vector<8x256xf32> -> vector<8x256xf32>
    %122 = arith.addf %119, %121 : vector<8x256xf32>
    %123 = vector.extract_strided_slice %122 {offsets = [0, 0], sizes = [8, 64], strides = [1, 1]} : vector<8x256xf32> to vector<8x64xf32>
    %124 = arith.negf %123 : vector<8x64xf32>
    %125 = math.exp %124 : vector<8x64xf32>
    %cst_42 = arith.constant 1.000000e+00 : f32
    %126 = vector.broadcast %cst_42 : f32 to vector<8x64xf32>
    %127 = arith.addf %126, %125 : vector<8x64xf32>
    %128 = arith.divf %126, %127 : vector<8x64xf32>
    %129 = vector.extract_strided_slice %122 {offsets = [0, 64], sizes = [8, 64], strides = [1, 1]} : vector<8x256xf32> to vector<8x64xf32>
    %130 = arith.negf %129 : vector<8x64xf32>
    %131 = math.exp %130 : vector<8x64xf32>
    %cst_43 = arith.constant 1.000000e+00 : f32
    %132 = vector.broadcast %cst_43 : f32 to vector<8x64xf32>
    %133 = arith.addf %132, %131 : vector<8x64xf32>
    %134 = arith.divf %132, %133 : vector<8x64xf32>
    %135 = vector.extract_strided_slice %122 {offsets = [0, 128], sizes = [8, 64], strides = [1, 1]} : vector<8x256xf32> to vector<8x64xf32>
    %136 = math.tanh %135 : vector<8x64xf32>
    %137 = vector.extract_strided_slice %122 {offsets = [0, 192], sizes = [8, 64], strides = [1, 1]} : vector<8x256xf32> to vector<8x64xf32>
    %138 = arith.negf %137 : vector<8x64xf32>
    %139 = math.exp %138 : vector<8x64xf32>
    %cst_44 = arith.constant 1.000000e+00 : f32
    %140 = vector.broadcast %cst_44 : f32 to vector<8x64xf32>
    %141 = arith.addf %140, %139 : vector<8x64xf32>
    %142 = arith.divf %140, %141 : vector<8x64xf32>
    %143 = arith.mulf %134, %116 : vector<8x64xf32>
    %144 = arith.mulf %128, %136 : vector<8x64xf32>
    %145 = arith.addf %143, %144 : vector<8x64xf32>
    %146 = math.tanh %145 : vector<8x64xf32>
    %147 = arith.mulf %142, %146 : vector<8x64xf32>
    %148 = vector.broadcast %c3_i32 : i32 to vector<8x64xi32>
    %149 = arith.cmpi slt, %148, %9 : vector<8x64xi32>
    %150 = arith.select %149, %147, %115 : vector<8x64xi1>, vector<8x64xf32>
    %151 = arith.select %149, %145, %116 : vector<8x64xi1>, vector<8x64xf32>
    %c4_i32 = arith.constant 4 : i32
    %152 = arith.index_cast %c4_i32 : i32 to index
    %c0_45 = arith.constant 0 : index
    %c0_46 = arith.constant 0 : index
    %153 = vector.load %arg11[%152, %c0_45, %c0_46] : memref<8x8x256xf32, #tpu.memory_space<vmem>>, vector<1x8x256xf32>
    %154 = vector.shape_cast %153 : vector<1x8x256xf32> to vector<8x256xf32>
    %c0_47 = arith.constant 0 : index
    %c0_48 = arith.constant 0 : index
    %155 = vector.load %arg4[%c0_47, %c0_48] : memref<64x256xf32, #tpu.memory_space<vmem>>, vector<64x256xf32>
    %cst_49 = arith.constant dense<0.000000e+00> : vector<8x256xf32>
    %156 = tpu.matmul %150, %155, %cst_49 {dimension_numbers = #tpu.dot_dimension_numbers<[1], [0], [0], [1], [0, 0, 1, 1], [], []>} : vector<8x64xf32>, vector<64x256xf32>, vector<8x256xf32> -> vector<8x256xf32>
    %157 = arith.addf %154, %156 : vector<8x256xf32>
    %158 = vector.extract_strided_slice %157 {offsets = [0, 0], sizes = [8, 64], strides = [1, 1]} : vector<8x256xf32> to vector<8x64xf32>
    %159 = arith.negf %158 : vector<8x64xf32>
    %160 = math.exp %159 : vector<8x64xf32>
    %cst_50 = arith.constant 1.000000e+00 : f32
    %161 = vector.broadcast %cst_50 : f32 to vector<8x64xf32>
    %162 = arith.addf %161, %160 : vector<8x64xf32>
    %163 = arith.divf %161, %162 : vector<8x64xf32>
    %164 = vector.extract_strided_slice %157 {offsets = [0, 64], sizes = [8, 64], strides = [1, 1]} : vector<8x256xf32> to vector<8x64xf32>
    %165 = arith.negf %164 : vector<8x64xf32>
    %166 = math.exp %165 : vector<8x64xf32>
    %cst_51 = arith.constant 1.000000e+00 : f32
    %167 = vector.broadcast %cst_51 : f32 to vector<8x64xf32>
    %168 = arith.addf %167, %166 : vector<8x64xf32>
    %169 = arith.divf %167, %168 : vector<8x64xf32>
    %170 = vector.extract_strided_slice %157 {offsets = [0, 128], sizes = [8, 64], strides = [1, 1]} : vector<8x256xf32> to vector<8x64xf32>
    %171 = math.tanh %170 : vector<8x64xf32>
    %172 = vector.extract_strided_slice %157 {offsets = [0, 192], sizes = [8, 64], strides = [1, 1]} : vector<8x256xf32> to vector<8x64xf32>
    %173 = arith.negf %172 : vector<8x64xf32>
    %174 = math.exp %173 : vector<8x64xf32>
    %cst_52 = arith.constant 1.000000e+00 : f32
    %175 = vector.broadcast %cst_52 : f32 to vector<8x64xf32>
    %176 = arith.addf %175, %174 : vector<8x64xf32>
    %177 = arith.divf %175, %176 : vector<8x64xf32>
    %178 = arith.mulf %169, %151 : vector<8x64xf32>
    %179 = arith.mulf %163, %171 : vector<8x64xf32>
    %180 = arith.addf %178, %179 : vector<8x64xf32>
    %181 = math.tanh %180 : vector<8x64xf32>
    %182 = arith.mulf %177, %181 : vector<8x64xf32>
    %183 = vector.broadcast %c4_i32 : i32 to vector<8x64xi32>
    %184 = arith.cmpi slt, %183, %9 : vector<8x64xi32>
    %185 = arith.select %184, %182, %150 : vector<8x64xi1>, vector<8x64xf32>
    %186 = arith.select %184, %180, %151 : vector<8x64xi1>, vector<8x64xf32>
    %c5_i32 = arith.constant 5 : i32
    %187 = arith.index_cast %c5_i32 : i32 to index
    %c0_53 = arith.constant 0 : index
    %c0_54 = arith.constant 0 : index
    %188 = vector.load %arg11[%187, %c0_53, %c0_54] : memref<8x8x256xf32, #tpu.memory_space<vmem>>, vector<1x8x256xf32>
    %189 = vector.shape_cast %188 : vector<1x8x256xf32> to vector<8x256xf32>
    %c0_55 = arith.constant 0 : index
    %c0_56 = arith.constant 0 : index
    %190 = vector.load %arg4[%c0_55, %c0_56] : memref<64x256xf32, #tpu.memory_space<vmem>>, vector<64x256xf32>
    %cst_57 = arith.constant dense<0.000000e+00> : vector<8x256xf32>
    %191 = tpu.matmul %185, %190, %cst_57 {dimension_numbers = #tpu.dot_dimension_numbers<[1], [0], [0], [1], [0, 0, 1, 1], [], []>} : vector<8x64xf32>, vector<64x256xf32>, vector<8x256xf32> -> vector<8x256xf32>
    %192 = arith.addf %189, %191 : vector<8x256xf32>
    %193 = vector.extract_strided_slice %192 {offsets = [0, 0], sizes = [8, 64], strides = [1, 1]} : vector<8x256xf32> to vector<8x64xf32>
    %194 = arith.negf %193 : vector<8x64xf32>
    %195 = math.exp %194 : vector<8x64xf32>
    %cst_58 = arith.constant 1.000000e+00 : f32
    %196 = vector.broadcast %cst_58 : f32 to vector<8x64xf32>
    %197 = arith.addf %196, %195 : vector<8x64xf32>
    %198 = arith.divf %196, %197 : vector<8x64xf32>
    %199 = vector.extract_strided_slice %192 {offsets = [0, 64], sizes = [8, 64], strides = [1, 1]} : vector<8x256xf32> to vector<8x64xf32>
    %200 = arith.negf %199 : vector<8x64xf32>
    %201 = math.exp %200 : vector<8x64xf32>
    %cst_59 = arith.constant 1.000000e+00 : f32
    %202 = vector.broadcast %cst_59 : f32 to vector<8x64xf32>
    %203 = arith.addf %202, %201 : vector<8x64xf32>
    %204 = arith.divf %202, %203 : vector<8x64xf32>
    %205 = vector.extract_strided_slice %192 {offsets = [0, 128], sizes = [8, 64], strides = [1, 1]} : vector<8x256xf32> to vector<8x64xf32>
    %206 = math.tanh %205 : vector<8x64xf32>
    %207 = vector.extract_strided_slice %192 {offsets = [0, 192], sizes = [8, 64], strides = [1, 1]} : vector<8x256xf32> to vector<8x64xf32>
    %208 = arith.negf %207 : vector<8x64xf32>
    %209 = math.exp %208 : vector<8x64xf32>
    %cst_60 = arith.constant 1.000000e+00 : f32
    %210 = vector.broadcast %cst_60 : f32 to vector<8x64xf32>
    %211 = arith.addf %210, %209 : vector<8x64xf32>
    %212 = arith.divf %210, %211 : vector<8x64xf32>
    %213 = arith.mulf %204, %186 : vector<8x64xf32>
    %214 = arith.mulf %198, %206 : vector<8x64xf32>
    %215 = arith.addf %213, %214 : vector<8x64xf32>
    %216 = math.tanh %215 : vector<8x64xf32>
    %217 = arith.mulf %212, %216 : vector<8x64xf32>
    %218 = vector.broadcast %c5_i32 : i32 to vector<8x64xi32>
    %219 = arith.cmpi slt, %218, %9 : vector<8x64xi32>
    %220 = arith.select %219, %217, %185 : vector<8x64xi1>, vector<8x64xf32>
    %221 = arith.select %219, %215, %186 : vector<8x64xi1>, vector<8x64xf32>
    %c6_i32 = arith.constant 6 : i32
    %222 = arith.index_cast %c6_i32 : i32 to index
    %c0_61 = arith.constant 0 : index
    %c0_62 = arith.constant 0 : index
    %223 = vector.load %arg11[%222, %c0_61, %c0_62] : memref<8x8x256xf32, #tpu.memory_space<vmem>>, vector<1x8x256xf32>
    %224 = vector.shape_cast %223 : vector<1x8x256xf32> to vector<8x256xf32>
    %c0_63 = arith.constant 0 : index
    %c0_64 = arith.constant 0 : index
    %225 = vector.load %arg4[%c0_63, %c0_64] : memref<64x256xf32, #tpu.memory_space<vmem>>, vector<64x256xf32>
    %cst_65 = arith.constant dense<0.000000e+00> : vector<8x256xf32>
    %226 = tpu.matmul %220, %225, %cst_65 {dimension_numbers = #tpu.dot_dimension_numbers<[1], [0], [0], [1], [0, 0, 1, 1], [], []>} : vector<8x64xf32>, vector<64x256xf32>, vector<8x256xf32> -> vector<8x256xf32>
    %227 = arith.addf %224, %226 : vector<8x256xf32>
    %228 = vector.extract_strided_slice %227 {offsets = [0, 0], sizes = [8, 64], strides = [1, 1]} : vector<8x256xf32> to vector<8x64xf32>
    %229 = arith.negf %228 : vector<8x64xf32>
    %230 = math.exp %229 : vector<8x64xf32>
    %cst_66 = arith.constant 1.000000e+00 : f32
    %231 = vector.broadcast %cst_66 : f32 to vector<8x64xf32>
    %232 = arith.addf %231, %230 : vector<8x64xf32>
    %233 = arith.divf %231, %232 : vector<8x64xf32>
    %234 = vector.extract_strided_slice %227 {offsets = [0, 64], sizes = [8, 64], strides = [1, 1]} : vector<8x256xf32> to vector<8x64xf32>
    %235 = arith.negf %234 : vector<8x64xf32>
    %236 = math.exp %235 : vector<8x64xf32>
    %cst_67 = arith.constant 1.000000e+00 : f32
    %237 = vector.broadcast %cst_67 : f32 to vector<8x64xf32>
    %238 = arith.addf %237, %236 : vector<8x64xf32>
    %239 = arith.divf %237, %238 : vector<8x64xf32>
    %240 = vector.extract_strided_slice %227 {offsets = [0, 128], sizes = [8, 64], strides = [1, 1]} : vector<8x256xf32> to vector<8x64xf32>
    %241 = math.tanh %240 : vector<8x64xf32>
    %242 = vector.extract_strided_slice %227 {offsets = [0, 192], sizes = [8, 64], strides = [1, 1]} : vector<8x256xf32> to vector<8x64xf32>
    %243 = arith.negf %242 : vector<8x64xf32>
    %244 = math.exp %243 : vector<8x64xf32>
    %cst_68 = arith.constant 1.000000e+00 : f32
    %245 = vector.broadcast %cst_68 : f32 to vector<8x64xf32>
    %246 = arith.addf %245, %244 : vector<8x64xf32>
    %247 = arith.divf %245, %246 : vector<8x64xf32>
    %248 = arith.mulf %239, %221 : vector<8x64xf32>
    %249 = arith.mulf %233, %241 : vector<8x64xf32>
    %250 = arith.addf %248, %249 : vector<8x64xf32>
    %251 = math.tanh %250 : vector<8x64xf32>
    %252 = arith.mulf %247, %251 : vector<8x64xf32>
    %253 = vector.broadcast %c6_i32 : i32 to vector<8x64xi32>
    %254 = arith.cmpi slt, %253, %9 : vector<8x64xi32>
    %255 = arith.select %254, %252, %220 : vector<8x64xi1>, vector<8x64xf32>
    %256 = arith.select %254, %250, %221 : vector<8x64xi1>, vector<8x64xf32>
    %c7_i32 = arith.constant 7 : i32
    %257 = arith.index_cast %c7_i32 : i32 to index
    %c0_69 = arith.constant 0 : index
    %c0_70 = arith.constant 0 : index
    %258 = vector.load %arg11[%257, %c0_69, %c0_70] : memref<8x8x256xf32, #tpu.memory_space<vmem>>, vector<1x8x256xf32>
    %259 = vector.shape_cast %258 : vector<1x8x256xf32> to vector<8x256xf32>
    %c0_71 = arith.constant 0 : index
    %c0_72 = arith.constant 0 : index
    %260 = vector.load %arg4[%c0_71, %c0_72] : memref<64x256xf32, #tpu.memory_space<vmem>>, vector<64x256xf32>
    %cst_73 = arith.constant dense<0.000000e+00> : vector<8x256xf32>
    %261 = tpu.matmul %255, %260, %cst_73 {dimension_numbers = #tpu.dot_dimension_numbers<[1], [0], [0], [1], [0, 0, 1, 1], [], []>} : vector<8x64xf32>, vector<64x256xf32>, vector<8x256xf32> -> vector<8x256xf32>
    %262 = arith.addf %259, %261 : vector<8x256xf32>
    %263 = vector.extract_strided_slice %262 {offsets = [0, 0], sizes = [8, 64], strides = [1, 1]} : vector<8x256xf32> to vector<8x64xf32>
    %264 = arith.negf %263 : vector<8x64xf32>
    %265 = math.exp %264 : vector<8x64xf32>
    %cst_74 = arith.constant 1.000000e+00 : f32
    %266 = vector.broadcast %cst_74 : f32 to vector<8x64xf32>
    %267 = arith.addf %266, %265 : vector<8x64xf32>
    %268 = arith.divf %266, %267 : vector<8x64xf32>
    %269 = vector.extract_strided_slice %262 {offsets = [0, 64], sizes = [8, 64], strides = [1, 1]} : vector<8x256xf32> to vector<8x64xf32>
    %270 = arith.negf %269 : vector<8x64xf32>
    %271 = math.exp %270 : vector<8x64xf32>
    %cst_75 = arith.constant 1.000000e+00 : f32
    %272 = vector.broadcast %cst_75 : f32 to vector<8x64xf32>
    %273 = arith.addf %272, %271 : vector<8x64xf32>
    %274 = arith.divf %272, %273 : vector<8x64xf32>
    %275 = vector.extract_strided_slice %262 {offsets = [0, 128], sizes = [8, 64], strides = [1, 1]} : vector<8x256xf32> to vector<8x64xf32>
    %276 = math.tanh %275 : vector<8x64xf32>
    %277 = vector.extract_strided_slice %262 {offsets = [0, 192], sizes = [8, 64], strides = [1, 1]} : vector<8x256xf32> to vector<8x64xf32>
    %278 = arith.negf %277 : vector<8x64xf32>
    %279 = math.exp %278 : vector<8x64xf32>
    %cst_76 = arith.constant 1.000000e+00 : f32
    %280 = vector.broadcast %cst_76 : f32 to vector<8x64xf32>
    %281 = arith.addf %280, %279 : vector<8x64xf32>
    %282 = arith.divf %280, %281 : vector<8x64xf32>
    %283 = arith.mulf %274, %256 : vector<8x64xf32>
    %284 = arith.mulf %268, %276 : vector<8x64xf32>
    %285 = arith.addf %283, %284 : vector<8x64xf32>
    %286 = math.tanh %285 : vector<8x64xf32>
    %287 = arith.mulf %282, %286 : vector<8x64xf32>
    %288 = vector.broadcast %c7_i32 : i32 to vector<8x64xi32>
    %289 = arith.cmpi slt, %288, %9 : vector<8x64xi32>
    %290 = arith.select %289, %287, %255 : vector<8x64xi1>, vector<8x64xf32>
    %291 = arith.select %289, %285, %256 : vector<8x64xi1>, vector<8x64xf32>
    %c8_i32 = arith.constant 8 : i32
    %c0_77 = arith.constant 0 : index
    %c0_78 = arith.constant 0 : index
    %292 = vector.load %arg6[%c0_77, %c0_78] : memref<64x128xf32, #tpu.memory_space<vmem>>, vector<64x128xf32>
    %cst_79 = arith.constant dense<0.000000e+00> : vector<8x128xf32>
    %293 = tpu.matmul %290, %292, %cst_79 {dimension_numbers = #tpu.dot_dimension_numbers<[1], [0], [0], [1], [0, 0, 1, 1], [], []>} : vector<8x64xf32>, vector<64x128xf32>, vector<8x128xf32> -> vector<8x128xf32>
    %c0_80 = arith.constant 0 : index
    %c0_81 = arith.constant 0 : index
    %294 = vector.load %arg7[%c0_80, %c0_81] : memref<1x128xf32, #tpu.memory_space<vmem>>, vector<1x128xf32>
    %295 = vector.broadcast %294 : vector<1x128xf32> to vector<8x128xf32>
    %296 = arith.addf %293, %295 : vector<8x128xf32>
    %cst_82 = arith.constant 0.000000e+00 : f32
    %297 = vector.broadcast %cst_82 : f32 to vector<8x128xf32>
    %298 = arith.maximumf %296, %297 : vector<8x128xf32>
    %c0_83 = arith.constant 0 : index
    %c0_84 = arith.constant 0 : index
    %299 = vector.load %arg8[%c0_83, %c0_84] : memref<128x128xf32, #tpu.memory_space<vmem>>, vector<128x128xf32>
    %cst_85 = arith.constant dense<0.000000e+00> : vector<8x128xf32>
    %300 = tpu.matmul %298, %299, %cst_85 {dimension_numbers = #tpu.dot_dimension_numbers<[1], [0], [0], [1], [0, 0, 1, 1], [], []>} : vector<8x128xf32>, vector<128x128xf32>, vector<8x128xf32> -> vector<8x128xf32>
    %c0_86 = arith.constant 0 : index
    %c0_87 = arith.constant 0 : index
    %301 = vector.load %arg9[%c0_86, %c0_87] : memref<1x128xf32, #tpu.memory_space<vmem>>, vector<1x128xf32>
    %302 = vector.broadcast %301 : vector<1x128xf32> to vector<8x128xf32>
    %303 = arith.addf %300, %302 : vector<8x128xf32>
    %304 = arith.negf %303 : vector<8x128xf32>
    %305 = math.exp %304 : vector<8x128xf32>
    %cst_88 = arith.constant 1.000000e+00 : f32
    %306 = vector.broadcast %cst_88 : f32 to vector<8x128xf32>
    %307 = arith.addf %306, %305 : vector<8x128xf32>
    %308 = arith.divf %306, %307 : vector<8x128xf32>
    %c0_89 = arith.constant 0 : index
    %c0_90 = arith.constant 0 : index
    %309 = vector.load %arg10[%c0_89, %c0_90] : memref<8x128xf32, #tpu.memory_space<vmem>>, vector<8x128xf32>
    tpu.vector_store %arg10[%c0_89, %c0_90], %308 {strides = array<i32>} : memref<8x128xf32, #tpu.memory_space<vmem>>, vector<8x128xf32>,
    return
  }
  func.func @transform_0(%arg0: i32) -> (i32, i32, i32) {
    %c0_i32 = arith.constant 0 : i32
    %c0_i32_0 = arith.constant 0 : i32
    %c0_i32_1 = arith.constant 0 : i32
    return %c0_i32, %arg0, %c0_i32_0 : i32, i32, i32
  }
  func.func @transform_1(%arg0: i32) -> (i32, i32) {
    %c0_i32 = arith.constant 0 : i32
    %c0_i32_0 = arith.constant 0 : i32
    return %arg0, %c0_i32 : i32, i32
  }
  func.func @transform_2(%arg0: i32) -> (i32, i32) {
    %c0_i32 = arith.constant 0 : i32
    %c0_i32_0 = arith.constant 0 : i32
    %c0_i32_1 = arith.constant 0 : i32
    return %c0_i32, %c0_i32_0 : i32, i32
  }
  func.func @transform_3(%arg0: i32) -> (i32, i32) {
    %c0_i32 = arith.constant 0 : i32
    %c0_i32_0 = arith.constant 0 : i32
    %c0_i32_1 = arith.constant 0 : i32
    return %c0_i32, %c0_i32_0 : i32, i32
  }
  func.func @transform_4(%arg0: i32) -> (i32, i32) {
    %c0_i32 = arith.constant 0 : i32
    %c0_i32_0 = arith.constant 0 : i32
    %c0_i32_1 = arith.constant 0 : i32
    return %c0_i32, %c0_i32_0 : i32, i32
  }
  func.func @transform_5(%arg0: i32) -> (i32, i32) {
    %c0_i32 = arith.constant 0 : i32
    %c0_i32_0 = arith.constant 0 : i32
    %c0_i32_1 = arith.constant 0 : i32
    return %c0_i32, %c0_i32_0 : i32, i32
  }
  func.func @transform_6(%arg0: i32) -> (i32, i32) {
    %c0_i32 = arith.constant 0 : i32
    %c0_i32_0 = arith.constant 0 : i32
    %c0_i32_1 = arith.constant 0 : i32
    return %c0_i32, %c0_i32_0 : i32, i32
  }
  func.func @transform_7(%arg0: i32) -> (i32, i32) {
    %c0_i32 = arith.constant 0 : i32
    %c0_i32_0 = arith.constant 0 : i32
    %c0_i32_1 = arith.constant 0 : i32
    return %c0_i32, %c0_i32_0 : i32, i32
  }
  func.func @transform_8(%arg0: i32) -> (i32, i32) {
    %c0_i32 = arith.constant 0 : i32
    %c0_i32_0 = arith.constant 0 : i32
    %c0_i32_1 = arith.constant 0 : i32
    return %c0_i32, %c0_i32_0 : i32, i32
  }
  func.func @transform_9(%arg0: i32) -> (i32, i32) {
    %c0_i32 = arith.constant 0 : i32
    %c0_i32_0 = arith.constant 0 : i32
    return %arg0, %c0_i32 : i32, i32
  }
}

</mosaic_0001>

<bundles_post_ra>
// kernel: tpu_custom_call.1
= control target key start
LH: loop header
LB: loop body
LE: loop exit
PB: predicated region body
PF: predicated region fallthrough
CT: control target
= control target key end

     0   :  { %14 = vsyncpa [#allocation4], 0  ;;  %s2435_s0 = inlined_call_operand.hbm [shape: f32[8,8,64], index: 0, kind: input, shape index: {}]   ;;  %s2436_s1 = inlined_call_operand.hbm [shape: s32[8,64], index: 1, kind: input, shape index: {}]   ;;  %s2437_s2 = inlined_call_operand.hbm [shape: f32[64,256], index: 2, kind: input, shape index: {}]   ;;  %s2438_s3 = inlined_call_operand.hbm [shape: f32[64,256], index: 3, kind: input, shape index: {}]   ;;  %s2439_s4 = inlined_call_operand.vmem [shape: f32[1,256], index: 4, kind: input, shape index: {}]   ;;  %s2440_s5 = inlined_call_operand.hbm [shape: f32[64,128], index: 5, kind: input, shape index: {}]   ;;  %s2441_s6 = inlined_call_operand.vmem [shape: f32[1,128], index: 6, kind: input, shape index: {}]   ;;  %s2442_s7 = inlined_call_operand.hbm [shape: f32[128,128], index: 7, kind: input, shape index: {}]   ;;  %s2443_s8 = inlined_call_operand.vmem [shape: f32[1,128], index: 8, kind: input, shape index: {}]   ;;  %s2444_s9 = inlined_call_operand.hbm [shape: f32[8,128], index: 9, kind: output, shape index: {}]  }
   0x1   :  { %15 = vsyncpa [#allocation7], 0 }
   0x2   :  { %16 = vsyncpa [#allocation10], 0 }
   0x3   :  { %17 = vsyncpa [#allocation13], 0 }
   0x4   :  { %18 = vsyncpa [#allocation5], 0  ;;  %s2051_s30 = smov [#allocation6]   ;;  %s1887_s13 = scalar_lea.hbm %s2436_s1, 128 }
   0x5   :  { %s37_s10 = sshll.u32 %s2051_s30, 4  ;;  %p1888_p0 = scmp.ne.s32.totalorder %s2436_s1, %s1887_s13  ;;  %s38_s10 = int_to_ptr.vmem [resolvable:$true] %s37_s10 }
   0x6   :  { %p1891_p1 = scmp.lt.u32.totalorder %s1887_s13, %s2436_s1 }
   0x8   :  { %p1893_p2 = pnand %p1891_p1, %p1888_p0 }
   0xa   :  { %1896 = shalt.err (!%p1893_p2)
}
   0xb   :  { %s1897_s18 = scalar_lea.vmem %s38_s10, 128  ;;  %p1902_p4 = scmp.lt.s32.totalorder %s38_s10, %s38_s10 }
   0xc   :  { %p1898_p3 = scmp.ne.s32.totalorder %s38_s10, %s1897_s18  ;;  %p1903_p5 = scmp.lt.s32.totalorder %s1897_s18, %s1897_s18 }
   0xe   :  { %p1904_p6 = por %p1903_p5, %p1902_p4 }
  0x10   :  { %p1905_p7 = pnand %p1904_p6, %p1898_p3 }
  0x12   :  { %1908 = shalt.err (!%p1905_p7)
}
  0x13   :  { %40 = dma.hbm_to_vmem [thread:$0]  %s2436_s1, 128, %s38_s10, [#allocation7]  }
  0x14   :  { %s2052_s21 = smov [#allocation9]   ;;  %s2053_s23 = smov [#allocation3]  }
  0x15   :  { %s58_s22 = sshll.u32 %s2052_s21, 4  ;;  %s24_s24 = sshll.u32 %s2053_s23, 4  ;;  %s59_s22 = int_to_ptr.vmem [resolvable:$true] %s58_s22  ;;  %s25_s24 = int_to_ptr.vmem [resolvable:$true] %s24_s24 }
  0x16   :  { %s1909_s27 = scalar_lea.hbm %s2438_s3, 2048 }
  0x17   :  { %p1910_p8 = scmp.ne.s32.totalorder %s2438_s3, %s1909_s27  ;;  %p1913_p9 = scmp.lt.u32.totalorder %s1909_s27, %s2438_s3 }
  0x19   :  { %p1915_p10 = pnand %p1913_p9, %p1910_p8 }
  0x1b   :  { %1918 = shalt.err (!%p1915_p10)
}
  0x1c   :  { %s1919_s1 = scalar_lea.vmem %s59_s22, 2048  ;;  %p1924_p12 = scmp.lt.s32.totalorder %s59_s22, %s59_s22 }
  0x1d   :  { %p1920_p11 = scmp.ne.s32.totalorder %s59_s22, %s1919_s1  ;;  %p1925_p13 = scmp.lt.s32.totalorder %s1919_s1, %s1919_s1 }
  0x1f   :  { %p1926_p0 = por %p1925_p13, %p1924_p12 }
  0x21   :  { %p1927_p1 = pnand %p1926_p0, %p1920_p11 }
  0x23   :  { %1930 = shalt.err (!%p1927_p1)
}
  0x24   :  { %s2054_s10 = smov 256   ;;  %s2055_s12 = smov 16  }
  0x25   :  { %64 = dma.hbm_to_vmem [thread:$0]  %s2438_s3, 2048, %s59_s22, [#allocation10], %s2054_s10, %s2054_s10, %s2055_s12  }
  0x26   :  { %s1931_s17 = scalar_lea.hbm %s2435_s0, 1024 }
  0x27   :  { %p1932_p2 = scmp.ne.s32.totalorder %s2435_s0, %s1931_s17  ;;  %p1935_p3 = scmp.lt.u32.totalorder %s1931_s17, %s2435_s0 }
  0x29   :  { %p1937_p4 = pnand %p1935_p3, %p1932_p2 }
  0x2b   :  { %1940 = shalt.err (!%p1937_p4)
}
  0x2c   :  { %s1941_s23 = scalar_lea.vmem %s25_s24, 1024  ;;  %p1946_p6 = scmp.lt.s32.totalorder %s25_s24, %s25_s24 }
  0x2d   :  { %p1942_p5 = scmp.ne.s32.totalorder %s25_s24, %s1941_s23  ;;  %p1947_p7 = scmp.lt.s32.totalorder %s1941_s23, %s1941_s23 }
  0x2f   :  { %p1948_p8 = por %p1947_p7, %p1946_p6 }
  0x31   :  { %p1949_p9 = pnand %p1948_p8, %p1942_p5 }
  0x33   :  { %1952 = shalt.err (!%p1949_p9)
}
  0x34   :  { %s2056_s3 = smov 128   ;;  %s2057_s22 = smov 8  }
  0x35   :  { %30 = dma.hbm_to_vmem [thread:$0]  %s2435_s0, 1024, %s25_s24, [#allocation4], %s2056_s3, %s2056_s3, %s2057_s22  }
  0x36   :  { %s2058_s27 = smov [#allocation8]   ;;  %s2059_s29 = smov [#allocation11]  }
  0x37   :  { %s46_s28 = sshll.u32 %s2058_s27, 4  ;;  %s72_s30 = sshll.u32 %s2059_s29, 4  ;;  %s47_s28 = int_to_ptr.vmem [resolvable:$true] %s46_s28  ;;  %s73_s30 = int_to_ptr.vmem [resolvable:$true] %s72_s30 }
  0x38   :  { %s1953_s13 = scalar_lea.hbm %s2437_s2, 2048 }
  0x39   :  { %p1954_p10 = scmp.ne.s32.totalorder %s2437_s2, %s1953_s13  ;;  %p1957_p11 = scmp.lt.u32.totalorder %s1953_s13, %s2437_s2 }
  0x3b   :  { %p1959_p12 = pnand %p1957_p11, %p1954_p10 }
  0x3d   :  { %1962 = shalt.err (!%p1959_p12)
}
  0x3e   :  { %s1963_s0 = scalar_lea.vmem %s47_s28, 2048  ;;  %p1968_p0 = scmp.lt.s32.totalorder %s47_s28, %s47_s28 }
  0x3f   :  { %p1964_p13 = scmp.ne.s32.totalorder %s47_s28, %s1963_s0  ;;  %p1969_p1 = scmp.lt.s32.totalorder %s1963_s0, %s1963_s0 }
  0x41   :  { %p1970_p2 = por %p1969_p1, %p1968_p0 }
  0x43   :  { %p1971_p3 = pnand %p1970_p2, %p1964_p13 }
  0x45   :  { %1974 = shalt.err (!%p1971_p3)
}
  0x46   :  { %52 = dma.hbm_to_vmem [thread:$0]  %s2437_s2, 2048, %s47_s28, [#allocation7], %s2054_s10, %s2054_s10, %s2055_s12  }
  0x47   :  { %s1975_s21 = scalar_lea.hbm %s2440_s5, 1024 }
  0x48   :  { %p1976_p4 = scmp.ne.s32.totalorder %s2440_s5, %s1975_s21  ;;  %p1979_p5 = scmp.lt.u32.totalorder %s1975_s21, %s2440_s5 }
  0x4a   :  { %p1981_p6 = pnand %p1979_p5, %p1976_p4 }
  0x4c   :  { %1984 = shalt.err (!%p1981_p6)
}
  0x4d   :  { %s1985_s29 = scalar_lea.vmem %s73_s30, 1024  ;;  %p1990_p8 = scmp.lt.s32.totalorder %s73_s30, %s73_s30 }
  0x4e   :  { %p1986_p7 = scmp.ne.s32.totalorder %s73_s30, %s1985_s29  ;;  %p1991_p9 = scmp.lt.s32.totalorder %s1985_s29, %s1985_s29 }
  0x50   :  { %p1992_p10 = por %p1991_p9, %p1990_p8 }
  0x52   :  { %p1993_p11 = pnand %p1992_p10, %p1986_p7 }
  0x54   :  { %1996 = shalt.err (!%p1993_p11)
}
  0x55   :  { %78 = dma.hbm_to_vmem [thread:$0]  %s2440_s5, 1024, %s73_s30, [#allocation10], %s2056_s3, %s2056_s3, %s2057_s22  }
  0x56   :  { %s2060_s12 = smov [#allocation12]   ;;  %s1997_s13 = scalar_lea.hbm %s2442_s7, 2048 }
  0x57   :  { %s86_s28 = sshll.u32 %s2060_s12, 4  ;;  %p1998_p12 = scmp.ne.s32.totalorder %s2442_s7, %s1997_s13  ;;  %s87_s28 = int_to_ptr.vmem [resolvable:$true] %s86_s28 }
  0x58   :  { %p2001_p13 = scmp.lt.u32.totalorder %s1997_s13, %s2442_s7 }
  0x5a   :  { %p2003_p0 = pnand %p2001_p13, %p1998_p12 }
  0x5c   :  { %2006 = shalt.err (!%p2003_p0)
}
  0x5d   :  { %s2007_s0 = scalar_lea.vmem %s87_s28, 2048  ;;  %p2012_p2 = scmp.lt.s32.totalorder %s87_s28, %s87_s28 }
  0x5e   :  { %p2008_p1 = scmp.ne.s32.totalorder %s87_s28, %s2007_s0  ;;  %p2013_p3 = scmp.lt.s32.totalorder %s2007_s0, %s2007_s0 }
  0x60   :  { %p2014_p4 = por %p2013_p3, %p2012_p2 }
  0x62   :  { %p2015_p5 = pnand %p2014_p4, %p2008_p1 }
  0x64   :  { %2018 = shalt.err (!%p2015_p5)
}
  0x65   :  { %92 = dma.hbm_to_vmem [thread:$0]  %s2442_s7, 2048, %s87_s28, [#allocation13], %s2056_s3, %s2056_s3, %s2057_s22  }
  0x66   :  { %2041 = dma.done.wait [#allocation4], 1024  }
  0x67   :  { %2042 = vsyncadd [#allocation4], 4294966272 }
  0x68   :  { %2043 = dma.done.wait [#allocation7], 2176  }
  0x69   :  { %2044 = vsyncadd [#allocation7], 4294965120 }
  0x6a   :  { %2045 = dma.done.wait [#allocation10], 3072  }
  0x6b   :  { %2046 = vsyncadd [#allocation10], 4294964224 }
  0x6c   :  { %2047 = dma.done.wait [#allocation13], 2048  }
  0x6d   :  { %2048 = vsyncadd [#allocation13], 4294965248  ;;  %v2061_v0 = vmov 0.0   ;;  %v122_v1 = vld [vmem:[#allocation8 + $0x8] sm:$0xff]  ;;  %v124_v2 = vld [vmem:[#allocation8 + $0x18] sm:$0xff]  ;;  %vm149_vm0 = vcmask 523264   ;;  %v139_v57 = vlaneseq }
  0x6e   :  { %238 = vmatprep.mubr.f32.mxu1 %v2061_v0  ;;  %501 = vmatprep.mubr.f32.mxu0 %v2061_v0  ;;  %v121_v3 = vld [vmem:[#allocation8] sm:$0xff]  ;;  %v1560_v4 = vpack.c.bf16 %v124_v2, %v122_v1  ;;  %v123_v5 = vld [vmem:[#allocation8 + $0x10] sm:$0xff]  ;;  %v126_v6 = vld [vmem:[#allocation8 + $0x28] sm:$0xff]  ;;  %vm2064_vm8 = vmmov 0   ;;  %s2065_s20 = smov [#allocation14]  }
  0x6f   :  { %v128_v7 = vld [vmem:[#allocation8 + $0x38] sm:$0xff]  ;;  %v1562_v8 = vpack.c.bf16 %v123_v5, %v121_v3  ;;  %v125_v10 = vld [vmem:[#allocation8 + $0x20] sm:$0xff]  ;;  %v127_v11 = vld [vmem:[#allocation8 + $0x30] sm:$0xff]  ;;  %v140_v58 = vshrl.u32 %v139_v57, 7  ;;  %s1433_s21 = sshll.u32 %s2065_s20, 4  ;;  %s1434_s21 = int_to_ptr.vmem [resolvable:$true] %s1433_s21 }
  0x70   :  { %v1564_v9 = vpack.c.bf16 %v128_v7, %v126_v6  ;;  %v130_v12 = vld [vmem:[#allocation8 + $0x48] sm:$0xff]  ;;  %1561 = vmatprep.subr.bf16.mxu1 %v1560_v4  ;;  %v132_v13 = vld [vmem:[#allocation8 + $0x58] sm:$0xff]  ;;  %v1566_v14 = vpack.c.bf16 %v127_v11, %v125_v10  ;;  %v129_v15 = vld [vmem:[#allocation8 + $0x40] sm:$0xff]  ;;  %p2024_p7 = scmp.lt.s32.totalorder %s1434_s21, %s1434_s21 }
  0x71   :  { %1563 = vmatpush1.bf16.msra.mxu1 %v1562_v8  ;;  %v131_v16 = vld [vmem:[#allocation8 + $0x50] sm:$0xff]  ;;  %v1568_v17 = vpack.c.bf16 %v132_v13, %v130_v12  ;;  %v134_v18 = vld [vmem:[#allocation8 + $0x68] sm:$0xff]  ;;  %v136_v19 = vld [vmem:[#allocation8 + $0x78] sm:$0xff]  ;;  %v141_v59 = vsub.s32 0, %v140_v58  ;;  %v145_v61 = vsub.s32 1, %v140_v58 }
  0x72   :  { %1565 = vmatprep.subr.bf16.mxu1 %v1564_v9  ;;  %v307_v20 = vld [vmem:[#allocation9 + $0x8] sm:$0xff]  ;;  %v309_v21 = vld [vmem:[#allocation9 + $0x18] sm:$0xff]  ;;  %v306_v22 = vld [vmem:[#allocation9] sm:$0xff]  ;;  %v1570_v26 = vpack.c.bf16 %v131_v16, %v129_v15  ;;  %v1572_v30 = vpack.c.bf16 %v136_v19, %v134_v18 }
  0x73   :  { %v308_v23 = vld [vmem:[#allocation9 + $0x10] sm:$0xff]  ;;  %v2205_v24 = vpack.c.bf16 %v309_v21, %v307_v20  ;;  %v311_v25 = vld [vmem:[#allocation9 + $0x28] sm:$0xff]  ;;  %v133_v27 = vld [vmem:[#allocation8 + $0x60] sm:$0xff] }
  0x74   :  { %v2207_v28 = vpack.c.bf16 %v308_v23, %v306_v22  ;;  %v313_v29 = vld [vmem:[#allocation9 + $0x38] sm:$0xff]  ;;  %v135_v31 = vld [vmem:[#allocation8 + $0x70] sm:$0xff]  ;;  %v310_v33 = vld [vmem:[#allocation9 + $0x20] sm:$0xff] }
  0x75   :  { %1567 = vmatpush1.bf16.msra.mxu1 %v1566_v14  ;;  %v2209_v32 = vpack.c.bf16 %v313_v29, %v311_v25  ;;  %v312_v34 = vld [vmem:[#allocation9 + $0x30] sm:$0xff]  ;;  %1593 = vmatprep.subr.bf16.mxu0 %v2205_v24  ;;  %v315_v35 = vld [vmem:[#allocation9 + $0x48] sm:$0xff]  ;;  %v317_v36 = vld [vmem:[#allocation9 + $0x58] sm:$0xff]  ;;  %v1574_v37 = vpack.c.bf16 %v135_v31, %v133_v27 }
  0x76   :  { %1569 = vmatprep.subr.bf16.mxu1 %v1568_v17  ;;  %1595 = vmatpush1.bf16.msra.mxu0 %v2207_v28  ;;  %v2214_v38 = vpack.c.bf16 %v312_v34, %v310_v33  ;;  %v2216_v39 = vpack.c.bf16 %v317_v36, %v315_v35  ;;  %v314_v40 = vld [vmem:[#allocation9 + $0x40] sm:$0xff]  ;;  %v316_v41 = vld [vmem:[#allocation9 + $0x50] sm:$0xff]  ;;  %v319_v42 = vld [vmem:[#allocation9 + $0x68] sm:$0xff] }
  0x77   :  { %1597 = vmatprep.subr.bf16.mxu0 %v2209_v32  ;;  %v321_v43 = vld [vmem:[#allocation9 + $0x78] sm:$0xff]  ;;  %v2220_v45 = vpack.c.bf16 %v316_v41, %v314_v40  ;;  %v318_v47 = vld [vmem:[#allocation9 + $0x60] sm:$0xff]  ;;  %v320_v48 = vld [vmem:[#allocation9 + $0x70] sm:$0xff] }
  0x78   :  { %v113_v44 = vld [vmem:[#allocation3] sm:$0xff]  ;;  %v2223_v46 = vpack.c.bf16 %v321_v43, %v319_v42  ;;  %v114_v49 = vld [vmem:[#allocation3 + $0x8] sm:$0xff]  ;;  %v2230_v50 = vpack.c.bf16 %v320_v48, %v318_v47  ;;  %v115_v51 = vld [vmem:[#allocation3 + $0x10] sm:$0xff] }
  0x79   :  { %1571 = vmatpush1.bf16.msra.mxu1 %v1570_v26  ;;  %v116_v52 = vld [vmem:[#allocation3 + $0x18] sm:$0xff]  ;;  %v117_v53 = vld [vmem:[#allocation3 + $0x20] sm:$0xff]  ;;  %v118_v54 = vld [vmem:[#allocation3 + $0x28] sm:$0xff] }
  0x7a   :  { %1573 = vmatprep.subr.bf16.mxu1 %v1572_v30  ;;  %1599 = vmatpush1.bf16.msra.mxu0 %v2214_v38  ;;  %v119_v55 = vld [vmem:[#allocation3 + $0x30] sm:$0xff]  ;;  %v120_v56 = vld [vmem:[#allocation3 + $0x38] sm:$0xff]  ;;  %v137_v60 = vld [vmem:[%s2439_s4] sm:$0x3]  ;;  %s2062_s4 = smov 64  }
  0x7b   :  { %1601 = vmatprep.subr.bf16.mxu0 %v2216_v39  ;;  %v142_v62 = vrot.slane %v137_v60, %v141_v59  ;;  %v146_v63 = vrot.slane %v137_v60, %v145_v61 }
  0x7d   :  { %1575 = vmatpush1.bf16.msra.mxu1 %v1574_v37 }
  0x7e   :  { %1577 = vmatprep.subr.bf16.mxu1 %v2205_v24  ;;  %1603 = vmatpush1.bf16.msra.mxu0 %v2220_v45 }
  0x7f   :  { %1605 = vmatprep.subr.bf16.mxu0 %v2223_v46 }
  0x80   :  { %1445 = vmatmul.mubr.msk.f32.vlgmr.msra.gmra.mrb[0].mxu1 %vm149_vm0, %v113_v44 }
  0x81   :  { %1579 = vmatpush1.bf16.msra.mxu1 %v2207_v28  ;;  %244 = vmatprep.mubr.f32.mxu1 %v2061_v0 }
  0x82   :  { %1581 = vmatprep.subr.bf16.mxu1 %v2209_v32  ;;  %1607 = vmatpush1.bf16.msra.mxu0 %v2230_v50 }
  0x83   :  { %1609 = vmatprep.subr.bf16.mxu0 %v2205_v24 }
  0x84   :  { %1446 = vmatmul.mubr.msk.f32.gmra.mrb[2].mxu1 %vm149_vm0, %v114_v49 }
  0x85   :  { %250 = vmatprep.mubr.f32.mxu1 %v2061_v0  ;;  %1583 = vmatpush1.bf16.msra.mxu1 %v2214_v38 }
  0x86   :  { %1585 = vmatprep.subr.bf16.mxu1 %v2216_v39 }
  0x88   :  { %1447 = vmatmul.mubr.msk.f32.gmra.mrb[4].mxu1 %vm149_vm0, %v115_v51 }
  0x89   :  { %256 = vmatprep.mubr.f32.mxu1 %v2061_v0  ;;  %1587 = vmatpush1.bf16.msra.mxu1 %v2220_v45 }
  0x8a   :  { %1589 = vmatprep.subr.bf16.mxu1 %v2223_v46 }
  0x8c   :  { %1448 = vmatmul.mubr.msk.f32.gmra.mrb[6].mxu1 %vm149_vm0, %v116_v52 }
  0x8d   :  { %262 = vmatprep.mubr.f32.mxu1 %v2061_v0  ;;  %1591 = vmatpush1.bf16.msra.mxu1 %v2230_v50 }
  0x90   :  { %1449 = vmatmul.mubr.msk.f32.gmra.mrb[8].mxu1 %vm149_vm0, %v117_v53 }
  0x91   :  { %268 = vmatprep.mubr.f32.mxu1 %v2061_v0 }
  0x94   :  { %1450 = vmatmul.mubr.msk.f32.gmra.mrb[10].mxu1 %vm149_vm0, %v118_v54 }
  0x95   :  { %274 = vmatprep.mubr.f32.mxu1 %v2061_v0 }
  0x98   :  { %1451 = vmatmul.mubr.msk.f32.gmra.mrb[12].mxu1 %vm149_vm0, %v119_v55 }
  0x99   :  { %280 = vmatprep.mubr.f32.mxu1 %v2061_v0 }
  0x9c   :  { %1452 = vmatmul.mubr.msk.f32.gmra.mrb[14].mxu1 %vm149_vm0, %v120_v56  ;;  %v2289_v56 = vld [vmem:[#allocation6] sm:$0xff] }
  0x9d   :  { %389 = vmatprep.mubr.f32.mxu1 %v2061_v0  ;;  %vm420_vm1 = vcmp.gt.s32.totalorder %v2289_v56, 0  ;;  %vm536_vm2 = vcmp.gt.s32.totalorder %v2289_v56, 1  ;;  %vm652_vm3 = vcmp.gt.s32.totalorder %v2289_v56, 2  ;;  %vm768_vm4 = vcmp.gt.s32.totalorder %v2289_v56, 3 }
  0x9e   :  { %vm884_vm5 = vcmp.gt.s32.totalorder %v2289_v56, 4  ;;  %vm1000_vm6 = vcmp.gt.s32.totalorder %v2289_v56, 5  ;;  %vm1116_vm7 = vcmp.gt.s32.totalorder %v2289_v56, 6  ;;  %vm1232_vm9 = vcmp.gt.s32.totalorder %v2289_v56, 7  ;;  %v1333_v56 = vld [vmem:[#allocation12 + $0x30] sm:$0xff] }
  0xa0   :  { %390 = vmatmul.mubr.f32.vlgmr.msra.gmra.mrb[0].mxu1 %v2061_v0 }
  0xa1   :  { %1522 = vmatprep.mubr.msk.f32.mxu1 %vm2064_vm8, %v2061_v0 }
 0x157   :  { %v246_v1 = vpop.f32.mrb[2].mxu1 }
 0x158   :  { %v2258_v2 = vadd.f32 %v246_v1, %v142_v62  ;;  %v248_v3 = vpop.f32.mrb[3].mxu1 }
 0x159   :  { %v2260_v4 = vadd.f32 %v248_v3, %v146_v63 }
 0x15b   :  { %v252_v5 = vpop.f32.mrb[4].mxu1 }
 0x15c   :  { %v2262_v6 = vadd.f32 %v252_v5, %v142_v62  ;;  %v254_v7 = vpop.f32.mrb[5].mxu1 }
 0x15d   :  { %v2264_v8 = vadd.f32 %v254_v7, %v146_v63 }
 0x15f   :  { %v258_v9 = vpop.f32.mrb[6].mxu1 }
 0x160   :  { %v2266_v10 = vadd.f32 %v258_v9, %v142_v62  ;;  %v260_v11 = vpop.f32.mrb[7].mxu1 }
 0x161   :  { %v2268_v12 = vadd.f32 %v260_v11, %v146_v63 }
 0x163   :  { %v264_v13 = vpop.f32.mrb[8].mxu1 }
 0x164   :  { %v2270_v14 = vadd.f32 %v264_v13, %v142_v62  ;;  %v266_v15 = vpop.f32.mrb[9].mxu1 }
 0x165   :  { %v2272_v16 = vadd.f32 %v266_v15, %v146_v63 }
 0x167   :  { %v270_v17 = vpop.f32.mrb[10].mxu1 }
 0x168   :  { %v2274_v18 = vadd.f32 %v270_v17, %v142_v62  ;;  %v272_v19 = vpop.f32.mrb[11].mxu1 }
 0x169   :  { %v2276_v20 = vadd.f32 %v272_v19, %v146_v63 }
 0x16b   :  { %v276_v21 = vpop.f32.mrb[12].mxu1 }
 0x16c   :  { %v2278_v22 = vadd.f32 %v276_v21, %v142_v62  ;;  %v278_v23 = vpop.f32.mrb[13].mxu1 }
 0x16d   :  { %v2280_v25 = vadd.f32 %v278_v23, %v146_v63 }
 0x16f   :  { %v282_v26 = vpop.f32.mrb[14].mxu1 }
 0x170   :  { %v2282_v27 = vadd.f32 %v282_v26, %v142_v62  ;;  %v284_v29 = vpop.f32.mrb[15].mxu1 }
 0x171   :  { %v2284_v30 = vadd.f32 %v284_v29, %v146_v63 }
 0x173   :  { %v391_v31 = vpop.f32.mrb[0].mxu1 }
 0x174   :  { %v1740_v33 = vadd.f32 %v391_v31, %v142_v62  ;;  %v393_v34 = vpop.f32.mrb[1].mxu1 }
 0x175   :  { %v1741_v36 = vadd.f32 %v393_v34, %v146_v63 }
 0x176   :  { %v1453_v35 = vmul.f32 -1.442695, %v1740_v33 }
 0x177   :  { %v1454_v44 = vmul.f32 -1.442695, %v1741_v36 }
 0x178   :  { %1787 = vpow2.f32 %v1453_v35 }
 0x179   :  { %1789 = vtanh.f32 %v1741_v36 }
 0x182   :  { %v1788_v37 = vpop.eup %1787 }
 0x183   :  { %v401_v40 = vadd.f32 1.0, %v1788_v37  ;;  %v1790_v41 = vpop.eup %1789 }
 0x185   :  { %1791 = vrcp.f32 %v401_v40 }
 0x186   :  { %1793 = vpow2.f32 %v1454_v44 }
 0x18f   :  { %v1792_v42 = vpop.eup %1791 }
 0x190   :  { %v412_v43 = vmul.f32 %v1792_v42, %v1790_v41  ;;  %v1794_v47 = vpop.eup %1793  ;;  %v411_v49 = vmul.f32 0.0, %v1792_v42 }
 0x191   :  { %v408_v48 = vadd.f32 1.0, %v1794_v47 }
 0x192   :  { %414 = vrot.lane.b32.xlu0 %v412_v43, %s2062_s4 }
 0x193   :  { %1795 = vrcp.f32 %v408_v48 }
 0x19d   :  { %v1796_v53 = vpop.eup %1795 }
 0x204   :  { %v415_v51 = vpop.permute.xlu0 %414 }
 0x205   :  { %v417_v52 = vadd.f32 %v415_v51, %v411_v49 }
 0x207   :  { %1797 = vtanh.f32 %v417_v52  ;;  %427 = vrot.lane.b32.xlu1 %v417_v52, %s2062_s4 }
 0x211   :  { %v1798_v54 = vpop.eup %1797 }
 0x212   :  { %v419_v55 = vmul.f32 %v1798_v54, %v1796_v53 }
 0x214   :  { %422 = vrot.lane.b32.xlu0 %v419_v55, %s2062_s4 }
 0x279   :  { %v428_v57 = vpop.permute.xlu1 %427 }
 0x27a   :  { %v430_v58 = vsel %vm420_vm1, %v428_v57, 0.0 }
 0x27b   :  { %524 = vrot.lane.b32.xlu1 %v430_v58, %s2062_s4 }
 0x286   :  { %v423_v59 = vpop.permute.xlu0 %422 }
 0x287   :  { %v425_v60 = vsel %vm420_vm1, %v423_v59, 0.0 }
 0x288   :  { %1455 = vmatmul.mubr.msk.f32.vlgmr.msra.gmra.mrb[0].mxu0 %vm149_vm0, %v425_v60 }
 0x289   :  { %1611 = vmatpush1.bf16.msra.mxu0 %v2207_v28  ;;  %617 = vmatprep.mubr.f32.mxu0 %v2061_v0 }
 0x28a   :  { %1613 = vmatprep.subr.bf16.mxu0 %v2209_v32 }
 0x28d   :  { %1615 = vmatpush1.bf16.msra.mxu0 %v2214_v38 }
 0x28e   :  { %1617 = vmatprep.subr.bf16.mxu0 %v2216_v39 }
 0x291   :  { %1619 = vmatpush1.bf16.msra.mxu0 %v2220_v45 }
 0x292   :  { %1621 = vmatprep.subr.bf16.mxu0 %v2223_v46 }
 0x295   :  { %1623 = vmatpush1.bf16.msra.mxu0 %v2230_v50 }
 0x296   :  { %1625 = vmatprep.subr.bf16.mxu0 %v2205_v24 }
 0x2ed   :  { %v525_v19 = vpop.permute.xlu1 %524 }
 0x35b   :  { %v503_v61 = vpop.f32.mrb[0].mxu0 }
 0x35c   :  { %v508_v62 = vadd.f32 %v503_v61, %v2258_v2  ;;  %v505_v63 = vpop.f32.mrb[1].mxu0 }
 0x35d   :  { %v509_v1 = vadd.f32 %v505_v63, %v2260_v4 }
 0x35e   :  { %v1456_v3 = vmul.f32 -1.442695, %v508_v62 }
 0x35f   :  { %v1457_v15 = vmul.f32 -1.442695, %v509_v1 }
 0x360   :  { %1799 = vpow2.f32 %v1456_v3 }
 0x361   :  { %1801 = vtanh.f32 %v509_v1 }
 0x36a   :  { %v1800_v5 = vpop.eup %1799 }
 0x36b   :  { %v513_v7 = vadd.f32 1.0, %v1800_v5  ;;  %v1802_v9 = vpop.eup %1801 }
 0x36d   :  { %1803 = vrcp.f32 %v513_v7 }
 0x36e   :  { %1805 = vpow2.f32 %v1457_v15 }
 0x377   :  { %v1804_v11 = vpop.eup %1803 }
 0x378   :  { %v528_v13 = vmul.f32 %v1804_v11, %v1802_v9  ;;  %v1806_v17 = vpop.eup %1805  ;;  %v527_v2 = vmul.f32 %v1804_v11, %v525_v19 }
 0x379   :  { %v520_v21 = vadd.f32 1.0, %v1806_v17 }
 0x37a   :  { %530 = vrot.lane.b32.xlu0 %v528_v13, %s2062_s4 }
 0x37b   :  { %1807 = vrcp.f32 %v520_v21 }
 0x385   :  { %v1808_v4 = vpop.eup %1807 }
 0x3ec   :  { %v531_v23 = vpop.permute.xlu0 %530 }
 0x3ed   :  { %v533_v26 = vadd.f32 %v531_v23, %v527_v2 }
 0x3ef   :  { %1809 = vtanh.f32 %v533_v26  ;;  %543 = vrot.lane.b32.xlu0 %v533_v26, %s2062_s4 }
 0x3f9   :  { %v1810_v29 = vpop.eup %1809 }
 0x3fa   :  { %v535_v31 = vmul.f32 %v1810_v29, %v1808_v4 }
 0x3fc   :  { %538 = vrot.lane.b32.xlu1 %v535_v31, %s2062_s4 }
 0x461   :  { %v544_v33 = vpop.permute.xlu0 %543 }
 0x462   :  { %v546_v34 = vsel %vm536_vm2, %v544_v33, %v430_v58 }
 0x463   :  { %640 = vrot.lane.b32.xlu1 %v546_v34, %s2062_s4 }
 0x46e   :  { %v539_v35 = vpop.permute.xlu1 %538 }
 0x46f   :  { %v541_v36 = vsel %vm536_vm2, %v539_v35, %v425_v60 }
 0x470   :  { %1458 = vmatmul.mubr.msk.f32.vlgmr.msra.gmra.mrb[2].mxu0 %vm149_vm0, %v541_v36 }
 0x471   :  { %1627 = vmatpush1.bf16.msra.mxu0 %v2207_v28  ;;  %733 = vmatprep.mubr.f32.mxu0 %v2061_v0 }
 0x472   :  { %1629 = vmatprep.subr.bf16.mxu0 %v2209_v32 }
 0x475   :  { %1631 = vmatpush1.bf16.msra.mxu0 %v2214_v38 }
 0x476   :  { %1633 = vmatprep.subr.bf16.mxu0 %v2216_v39 }
 0x479   :  { %1635 = vmatpush1.bf16.msra.mxu0 %v2220_v45 }
 0x47a   :  { %1637 = vmatprep.subr.bf16.mxu0 %v2223_v46 }
 0x47d   :  { %1639 = vmatpush1.bf16.msra.mxu0 %v2230_v50 }
 0x47e   :  { %1641 = vmatprep.subr.bf16.mxu0 %v2205_v24 }
 0x4d5   :  { %v641_v54 = vpop.permute.xlu1 %640 }
 0x543   :  { %v619_v37 = vpop.f32.mrb[2].mxu0 }
 0x544   :  { %v624_v40 = vadd.f32 %v619_v37, %v2262_v6  ;;  %v621_v41 = vpop.f32.mrb[3].mxu0 }
 0x545   :  { %v625_v42 = vadd.f32 %v621_v41, %v2264_v8 }
 0x546   :  { %v1459_v43 = vmul.f32 -1.442695, %v624_v40 }
 0x547   :  { %v1460_v52 = vmul.f32 -1.442695, %v625_v42 }
 0x548   :  { %1811 = vpow2.f32 %v1459_v43 }
 0x549   :  { %1813 = vtanh.f32 %v625_v42 }
 0x552   :  { %v1812_v44 = vpop.eup %1811 }
 0x553   :  { %v629_v47 = vadd.f32 1.0, %v1812_v44  ;;  %v1814_v48 = vpop.eup %1813 }
 0x555   :  { %1815 = vrcp.f32 %v629_v47 }
 0x556   :  { %1817 = vpow2.f32 %v1460_v52 }
 0x55f   :  { %v1816_v49 = vpop.eup %1815 }
 0x560   :  { %v644_v51 = vmul.f32 %v1816_v49, %v1814_v48  ;;  %v1818_v53 = vpop.eup %1817  ;;  %v643_v6 = vmul.f32 %v1816_v49, %v641_v54 }
 0x561   :  { %v636_v55 = vadd.f32 1.0, %v1818_v53 }
 0x562   :  { %646 = vrot.lane.b32.xlu0 %v644_v51, %s2062_s4 }
 0x563   :  { %1819 = vrcp.f32 %v636_v55 }
 0x56d   :  { %v1820_v8 = vpop.eup %1819 }
 0x5d4   :  { %v647_v57 = vpop.permute.xlu0 %646 }
 0x5d5   :  { %v649_v58 = vadd.f32 %v647_v57, %v643_v6 }
 0x5d7   :  { %1821 = vtanh.f32 %v649_v58  ;;  %659 = vrot.lane.b32.xlu0 %v649_v58, %s2062_s4 }
 0x5e1   :  { %v1822_v59 = vpop.eup %1821 }
 0x5e2   :  { %v651_v60 = vmul.f32 %v1822_v59, %v1820_v8 }
 0x5e4   :  { %654 = vrot.lane.b32.xlu1 %v651_v60, %s2062_s4 }
 0x649   :  { %v660_v61 = vpop.permute.xlu0 %659 }
 0x64a   :  { %v662_v62 = vsel %vm652_vm3, %v660_v61, %v546_v34 }
 0x64b   :  { %756 = vrot.lane.b32.xlu1 %v662_v62, %s2062_s4 }
 0x656   :  { %v655_v63 = vpop.permute.xlu1 %654 }
 0x657   :  { %v657_v1 = vsel %vm652_vm3, %v655_v63, %v541_v36 }
 0x658   :  { %1461 = vmatmul.mubr.msk.f32.vlgmr.msra.gmra.mrb[4].mxu0 %vm149_vm0, %v657_v1 }
 0x659   :  { %1643 = vmatpush1.bf16.msra.mxu0 %v2207_v28  ;;  %849 = vmatprep.mubr.f32.mxu0 %v2061_v0 }
 0x65a   :  { %1645 = vmatprep.subr.bf16.mxu0 %v2209_v32 }
 0x65d   :  { %1647 = vmatpush1.bf16.msra.mxu0 %v2214_v38 }
 0x65e   :  { %1649 = vmatprep.subr.bf16.mxu0 %v2216_v39 }
 0x661   :  { %1651 = vmatpush1.bf16.msra.mxu0 %v2220_v45 }
 0x662   :  { %1653 = vmatprep.subr.bf16.mxu0 %v2223_v46 }
 0x665   :  { %1655 = vmatpush1.bf16.msra.mxu0 %v2230_v50 }
 0x666   :  { %1657 = vmatprep.subr.bf16.mxu0 %v2205_v24 }
 0x6bd   :  { %v757_v26 = vpop.permute.xlu1 %756 }
 0x72b   :  { %v735_v3 = vpop.f32.mrb[4].mxu0 }
 0x72c   :  { %v740_v5 = vadd.f32 %v735_v3, %v2266_v10  ;;  %v737_v7 = vpop.f32.mrb[5].mxu0 }
 0x72d   :  { %v741_v9 = vadd.f32 %v737_v7, %v2268_v12 }
 0x72e   :  { %v1462_v11 = vmul.f32 -1.442695, %v740_v5 }
 0x72f   :  { %v1463_v2 = vmul.f32 -1.442695, %v741_v9 }
 0x730   :  { %1823 = vpow2.f32 %v1462_v11 }
 0x731   :  { %1825 = vtanh.f32 %v741_v9 }
 0x73a   :  { %v1824_v13 = vpop.eup %1823 }
 0x73b   :  { %v745_v15 = vadd.f32 1.0, %v1824_v13  ;;  %v1826_v17 = vpop.eup %1825 }
 0x73d   :  { %1827 = vrcp.f32 %v745_v15 }
 0x73e   :  { %1829 = vpow2.f32 %v1463_v2 }
 0x747   :  { %v1828_v19 = vpop.eup %1827 }
 0x748   :  { %v760_v21 = vmul.f32 %v1828_v19, %v1826_v17  ;;  %v1830_v23 = vpop.eup %1829  ;;  %v759_v10 = vmul.f32 %v1828_v19, %v757_v26 }
 0x749   :  { %v752_v4 = vadd.f32 1.0, %v1830_v23 }
 0x74a   :  { %762 = vrot.lane.b32.xlu0 %v760_v21, %s2062_s4 }
 0x74b   :  { %1831 = vrcp.f32 %v752_v4 }
 0x755   :  { %v1832_v12 = vpop.eup %1831 }
 0x7bc   :  { %v763_v29 = vpop.permute.xlu0 %762 }
 0x7bd   :  { %v765_v31 = vadd.f32 %v763_v29, %v759_v10 }
 0x7bf   :  { %1833 = vtanh.f32 %v765_v31  ;;  %775 = vrot.lane.b32.xlu0 %v765_v31, %s2062_s4 }
 0x7c9   :  { %v1834_v33 = vpop.eup %1833 }
 0x7ca   :  { %v767_v34 = vmul.f32 %v1834_v33, %v1832_v12 }
 0x7cc   :  { %770 = vrot.lane.b32.xlu1 %v767_v34, %s2062_s4 }
 0x831   :  { %v776_v35 = vpop.permute.xlu0 %775 }
 0x832   :  { %v778_v36 = vsel %vm768_vm4, %v776_v35, %v662_v62 }
 0x833   :  { %872 = vrot.lane.b32.xlu1 %v778_v36, %s2062_s4 }
 0x83e   :  { %v771_v37 = vpop.permute.xlu1 %770 }
 0x83f   :  { %v773_v40 = vsel %vm768_vm4, %v771_v37, %v657_v1 }
 0x840   :  { %1464 = vmatmul.mubr.msk.f32.vlgmr.msra.gmra.mrb[6].mxu0 %vm149_vm0, %v773_v40 }
 0x841   :  { %1659 = vmatpush1.bf16.msra.mxu0 %v2207_v28  ;;  %965 = vmatprep.mubr.f32.mxu0 %v2061_v0 }
 0x842   :  { %1661 = vmatprep.subr.bf16.mxu0 %v2209_v32 }
 0x845   :  { %1663 = vmatpush1.bf16.msra.mxu0 %v2214_v38 }
 0x846   :  { %1665 = vmatprep.subr.bf16.mxu0 %v2216_v39 }
 0x849   :  { %1667 = vmatpush1.bf16.msra.mxu0 %v2220_v45 }
 0x84a   :  { %1669 = vmatprep.subr.bf16.mxu0 %v2223_v46 }
 0x84d   :  { %1671 = vmatpush1.bf16.msra.mxu0 %v2230_v50 }
 0x84e   :  { %1673 = vmatprep.subr.bf16.mxu0 %v2205_v24 }
 0x8a5   :  { %v873_v6 = vpop.permute.xlu1 %872 }
 0x913   :  { %v851_v41 = vpop.f32.mrb[6].mxu0 }
 0x914   :  { %v856_v42 = vadd.f32 %v851_v41, %v2270_v14  ;;  %v853_v43 = vpop.f32.mrb[7].mxu0 }
 0x915   :  { %v857_v44 = vadd.f32 %v853_v43, %v2272_v16 }
 0x916   :  { %v1465_v47 = vmul.f32 -1.442695, %v856_v42 }
 0x917   :  { %v1466_v54 = vmul.f32 -1.442695, %v857_v44 }
 0x918   :  { %1835 = vpow2.f32 %v1465_v47 }
 0x919   :  { %1837 = vtanh.f32 %v857_v44 }
 0x922   :  { %v1836_v48 = vpop.eup %1835 }
 0x923   :  { %v861_v49 = vadd.f32 1.0, %v1836_v48  ;;  %v1838_v51 = vpop.eup %1837 }
 0x925   :  { %1839 = vrcp.f32 %v861_v49 }
 0x926   :  { %1841 = vpow2.f32 %v1466_v54 }
 0x92f   :  { %v1840_v52 = vpop.eup %1839 }
 0x930   :  { %v876_v53 = vmul.f32 %v1840_v52, %v1838_v51  ;;  %v1842_v55 = vpop.eup %1841  ;;  %v875_v14 = vmul.f32 %v1840_v52, %v873_v6 }
 0x931   :  { %v868_v57 = vadd.f32 1.0, %v1842_v55 }
 0x932   :  { %878 = vrot.lane.b32.xlu0 %v876_v53, %s2062_s4 }
 0x933   :  { %1843 = vrcp.f32 %v868_v57 }
 0x93d   :  { %v1844_v16 = vpop.eup %1843 }
 0x9a4   :  { %v879_v58 = vpop.permute.xlu0 %878 }
 0x9a5   :  { %v881_v8 = vadd.f32 %v879_v58, %v875_v14 }
 0x9a7   :  { %1845 = vtanh.f32 %v881_v8  ;;  %891 = vrot.lane.b32.xlu0 %v881_v8, %s2062_s4 }
 0x9b1   :  { %v1846_v59 = vpop.eup %1845 }
 0x9b2   :  { %v883_v60 = vmul.f32 %v1846_v59, %v1844_v16 }
 0x9b4   :  { %886 = vrot.lane.b32.xlu1 %v883_v60, %s2062_s4 }
 0xa19   :  { %v892_v61 = vpop.permute.xlu0 %891 }
 0xa1a   :  { %v894_v62 = vsel %vm884_vm5, %v892_v61, %v778_v36 }
 0xa1b   :  { %988 = vrot.lane.b32.xlu1 %v894_v62, %s2062_s4 }
 0xa26   :  { %v887_v63 = vpop.permute.xlu1 %886 }
 0xa27   :  { %v889_v1 = vsel %vm884_vm5, %v887_v63, %v773_v40  ;;  %v1238_v63 = vld [vmem:[#allocation11] sm:$0xff] }
 0xa28   :  { %1467 = vmatmul.mubr.msk.f32.vlgmr.msra.gmra.mrb[8].mxu0 %vm149_vm0, %v889_v1 }
 0xa29   :  { %1675 = vmatpush1.bf16.msra.mxu0 %v2207_v28  ;;  %1081 = vmatprep.mubr.f32.mxu0 %v2061_v0 }
 0xa2a   :  { %1677 = vmatprep.subr.bf16.mxu0 %v2209_v32 }
 0xa2d   :  { %1679 = vmatpush1.bf16.msra.mxu0 %v2214_v38 }
 0xa2e   :  { %1681 = vmatprep.subr.bf16.mxu0 %v2216_v39 }
 0xa31   :  { %1683 = vmatpush1.bf16.msra.mxu0 %v2220_v45 }
 0xa32   :  { %1685 = vmatprep.subr.bf16.mxu0 %v2223_v46 }
 0xa35   :  { %1687 = vmatpush1.bf16.msra.mxu0 %v2230_v50 }
 0xa36   :  { %1689 = vmatprep.subr.bf16.mxu0 %v2205_v24 }
 0xa8d   :  { %v989_v23 = vpop.permute.xlu1 %988 }
 0xafb   :  { %v967_v3 = vpop.f32.mrb[8].mxu0 }
 0xafc   :  { %v972_v5 = vadd.f32 %v967_v3, %v2274_v18  ;;  %v969_v7 = vpop.f32.mrb[9].mxu0  ;;  %v1240_v3 = vld [vmem:[#allocation11 + $0x10] sm:$0xff] }
 0xafd   :  { %v973_v9 = vadd.f32 %v969_v7, %v2276_v20  ;;  %v1241_v7 = vld [vmem:[#allocation11 + $0x18] sm:$0xff] }
 0xafe   :  { %v1468_v11 = vmul.f32 -1.442695, %v972_v5  ;;  %v2063_v5 = vmov 0.0|0.0  }
 0xaff   :  { %v1469_v2 = vmul.f32 -1.442695, %v973_v9  ;;  %1704 = vmatprep.subr.bf16.mxu1 %v2063_v5 }
 0xb00   :  { %1847 = vpow2.f32 %v1468_v11  ;;  %v1243_v11 = vld [vmem:[#allocation11 + $0x28] sm:$0xff] }
 0xb01   :  { %1849 = vtanh.f32 %v973_v9  ;;  %v1242_v9 = vld [vmem:[#allocation11 + $0x20] sm:$0xff] }
 0xb0a   :  { %v1848_v13 = vpop.eup %1847 }
 0xb0b   :  { %v977_v15 = vadd.f32 1.0, %v1848_v13  ;;  %v1850_v17 = vpop.eup %1849  ;;  %v1711_v13 = vpack.c.bf16 %v1243_v11, %v1242_v9 }
 0xb0d   :  { %1851 = vrcp.f32 %v977_v15  ;;  %v1244_v15 = vld [vmem:[#allocation11 + $0x30] sm:$0xff] }
 0xb0e   :  { %1853 = vpow2.f32 %v1469_v2 }
 0xb17   :  { %v1852_v19 = vpop.eup %1851 }
 0xb18   :  { %v992_v21 = vmul.f32 %v1852_v19, %v1850_v17  ;;  %v1854_v24 = vpop.eup %1853  ;;  %v991_v18 = vmul.f32 %v1852_v19, %v989_v23  ;;  %v1245_v17 = vld [vmem:[#allocation11 + $0x38] sm:$0xff] }
 0xb19   :  { %v984_v26 = vadd.f32 1.0, %v1854_v24  ;;  %v1714_v19 = vpack.c.bf16 %v1245_v17, %v1244_v15 }
 0xb1a   :  { %994 = vrot.lane.b32.xlu0 %v992_v21, %s2062_s4 }
 0xb1b   :  { %1855 = vrcp.f32 %v984_v26 }
 0xb25   :  { %v1856_v20 = vpop.eup %1855 }
 0xb8c   :  { %v995_v4 = vpop.permute.xlu0 %994 }
 0xb8d   :  { %v997_v10 = vadd.f32 %v995_v4, %v991_v18 }
 0xb8f   :  { %1857 = vtanh.f32 %v997_v10  ;;  %1007 = vrot.lane.b32.xlu0 %v997_v10, %s2062_s4 }
 0xb99   :  { %v1858_v29 = vpop.eup %1857 }
 0xb9a   :  { %v999_v31 = vmul.f32 %v1858_v29, %v1856_v20 }
 0xb9c   :  { %1002 = vrot.lane.b32.xlu1 %v999_v31, %s2062_s4  ;;  %v1327_v31 = vld [vmem:[#allocation12] sm:$0xff] }
 0xc01   :  { %v1008_v12 = vpop.permute.xlu0 %1007 }
 0xc02   :  { %v1010_v33 = vsel %vm1000_vm6, %v1008_v12, %v894_v62  ;;  %v1328_v12 = vld [vmem:[#allocation12 + $0x8] sm:$0xff] }
 0xc03   :  { %1104 = vrot.lane.b32.xlu1 %v1010_v33, %s2062_s4 }
 0xc0e   :  { %v1003_v34 = vpop.permute.xlu1 %1002 }
 0xc0f   :  { %v1005_v35 = vsel %vm1000_vm6, %v1003_v34, %v889_v1  ;;  %v1239_v1 = vld [vmem:[#allocation11 + $0x8] sm:$0xff] }
 0xc10   :  { %1470 = vmatmul.mubr.msk.f32.vlgmr.msra.gmra.mrb[10].mxu0 %vm149_vm0, %v1005_v35 }
 0xc11   :  { %1691 = vmatpush1.bf16.msra.mxu0 %v2207_v28  ;;  %1197 = vmatprep.mubr.f32.mxu0 %v2061_v0 }
 0xc12   :  { %1693 = vmatprep.subr.bf16.mxu0 %v2209_v32 }
 0xc15   :  { %1695 = vmatpush1.bf16.msra.mxu0 %v2214_v38 }
 0xc16   :  { %1697 = vmatprep.subr.bf16.mxu0 %v2216_v39 }
 0xc19   :  { %1699 = vmatpush1.bf16.msra.mxu0 %v2220_v45 }
 0xc1a   :  { %1701 = vmatprep.subr.bf16.mxu0 %v2223_v46 }
 0xc1d   :  { %1703 = vmatpush1.bf16.msra.mxu0 %v2230_v50 }
 0xc75   :  { %v1105_v50 = vpop.permute.xlu1 %1104 }
 0xce3   :  { %v1083_v36 = vpop.f32.mrb[10].mxu0 }
 0xce4   :  { %v1088_v37 = vadd.f32 %v1083_v36, %v2278_v22  ;;  %v1085_v40 = vpop.f32.mrb[11].mxu0  ;;  %v1330_v36 = vld [vmem:[#allocation12 + $0x18] sm:$0xff] }
 0xce5   :  { %v1089_v28 = vadd.f32 %v1085_v40, %v2280_v25 }
 0xce6   :  { %v1471_v41 = vmul.f32 -1.442695, %v1088_v37 }
 0xce7   :  { %v1472_v45 = vmul.f32 -1.442695, %v1089_v28 }
 0xce8   :  { %1859 = vpow2.f32 %v1471_v41  ;;  %v1332_v41 = vld [vmem:[#allocation12 + $0x28] sm:$0xff] }
 0xce9   :  { %1861 = vtanh.f32 %v1089_v28  ;;  %v1331_v28 = vld [vmem:[#allocation12 + $0x20] sm:$0xff] }
 0xcf2   :  { %v1860_v42 = vpop.eup %1859 }
 0xcf3   :  { %v1093_v32 = vadd.f32 1.0, %v1860_v42  ;;  %v1862_v38 = vpop.eup %1861  ;;  %v1723_v42 = vpack.c.bf16 %v1332_v41, %v1331_v28 }
 0xcf5   :  { %1863 = vrcp.f32 %v1093_v32  ;;  %v1334_v32 = vld [vmem:[#allocation12 + $0x38] sm:$0xff] }
 0xcf6   :  { %1865 = vpow2.f32 %v1472_v45 }
 0xcff   :  { %v1864_v39 = vpop.eup %1863 }
 0xd00   :  { %v1108_v43 = vmul.f32 %v1864_v39, %v1862_v38  ;;  %v1866_v46 = vpop.eup %1865  ;;  %v1107_v22 = vmul.f32 %v1864_v39, %v1105_v50  ;;  %v1726_v38 = vpack.c.bf16 %v1334_v32, %v1333_v56  ;;  %v1335_v39 = vld [vmem:[#allocation12 + $0x40] sm:$0xff] }
 0xd01   :  { %v1100_v44 = vadd.f32 1.0, %v1866_v46  ;;  %v1338_v46 = vld [vmem:[#allocation12 + $0x58] sm:$0xff] }
 0xd02   :  { %1110 = vrot.lane.b32.xlu0 %v1108_v43, %s2062_s4  ;;  %v1336_v43 = vld [vmem:[#allocation12 + $0x48] sm:$0xff] }
 0xd03   :  { %1867 = vrcp.f32 %v1100_v44  ;;  %v1729_v45 = vpack.c.bf16 %v1336_v43, %v1335_v39  ;;  %v1339_v44 = vld [vmem:[#allocation12 + $0x60] sm:$0xff] }
 0xd0d   :  { %v1868_v25 = vpop.eup %1867 }
 0xd74   :  { %v1111_v47 = vpop.permute.xlu0 %1110 }
 0xd75   :  { %v1113_v48 = vadd.f32 %v1111_v47, %v1107_v22  ;;  %v1340_v22 = vld [vmem:[#allocation12 + $0x68] sm:$0xff] }
 0xd76   :  { %v1735_v47 = vpack.c.bf16 %v1340_v22, %v1339_v44 }
 0xd77   :  { %1869 = vtanh.f32 %v1113_v48  ;;  %1123 = vrot.lane.b32.xlu0 %v1113_v48, %s2062_s4  ;;  %v1341_v48 = vld [vmem:[#allocation12 + $0x70] sm:$0xff] }
 0xd81   :  { %v1870_v49 = vpop.eup %1869 }
 0xd82   :  { %v1115_v51 = vmul.f32 %v1870_v49, %v1868_v25  ;;  %v1342_v25 = vld [vmem:[#allocation12 + $0x78] sm:$0xff] }
 0xd83   :  { %v1738_v49 = vpack.c.bf16 %v1342_v25, %v1341_v48 }
 0xd84   :  { %1118 = vrot.lane.b32.xlu1 %v1115_v51, %s2062_s4  ;;  %v1476_v51 = vld [vmem:[%s2441_s6] ss:$0 sm:$0xff]  ;;  %s2019_s6 = scalar_lea.vmem %s1434_s21, 128 }
 0xd85   :  { %p2020_p6 = scmp.ne.s32.totalorder %s1434_s21, %s2019_s6  ;;  %p2025_p8 = scmp.lt.s32.totalorder %s2019_s6, %s2019_s6 }
 0xd87   :  { %p2026_p9 = por %p2025_p8, %p2024_p7 }
 0xd89   :  { %p2027_p10 = pnand %p2026_p9, %p2020_p6 }
 0xde9   :  { %v1124_v52 = vpop.permute.xlu0 %1123 }
 0xdea   :  { %v1126_v53 = vsel %vm1116_vm7, %v1124_v52, %v1010_v33  ;;  %v1717_v33 = vpack.c.bf16 %v1328_v12, %v1327_v31 }
 0xdeb   :  { %1220 = vrot.lane.b32.xlu1 %v1126_v53, %s2062_s4 }
 0xdf6   :  { %v1119_v54 = vpop.permute.xlu1 %1118 }
 0xdf7   :  { %v1121_v55 = vsel %vm1116_vm7, %v1119_v54, %v1005_v35  ;;  %v1329_v35 = vld [vmem:[#allocation12 + $0x10] sm:$0xff] }
 0xdf8   :  { %1473 = vmatmul.mubr.msk.f32.vlgmr.msra.gmra.mrb[12].mxu0 %vm149_vm0, %v1121_v55  ;;  %v1720_v40 = vpack.c.bf16 %v1330_v36, %v1329_v35 }
 0xe5d   :  { %v1221_v24 = vpop.permute.xlu1 %1220 }
 0xecb   :  { %v1199_v6 = vpop.f32.mrb[12].mxu0 }
 0xecc   :  { %v1204_v57 = vadd.f32 %v1199_v6, %v2282_v27  ;;  %v1201_v14 = vpop.f32.mrb[13].mxu0  ;;  %v1705_v27 = vpack.c.bf16 %v1239_v1, %v1238_v63  ;;  %v1478_v6 = vld [vmem:[%s2443_s8] ss:$0 sm:$0xff] }
 0xecd   :  { %v1205_v58 = vadd.f32 %v1201_v14, %v2284_v30  ;;  %v1708_v30 = vpack.c.bf16 %v1241_v7, %v1240_v3 }
 0xece   :  { %v1474_v8 = vmul.f32 -1.442695, %v1204_v57  ;;  %1706 = vmatpush3.bf16.msra.mxu1 %v1705_v27 }
 0xecf   :  { %1707 = vmatprep.subr.bf16.mxu1 %v2063_v5  ;;  %v1475_v21 = vmul.f32 -1.442695, %v1205_v58 }
 0xed0   :  { %1871 = vpow2.f32 %v1474_v8 }
 0xed1   :  { %1873 = vtanh.f32 %v1205_v58 }
 0xed2   :  { %1709 = vmatpush3.bf16.msra.mxu1 %v1708_v30 }
 0xed3   :  { %1710 = vmatprep.subr.bf16.mxu1 %v2063_v5 }
 0xed6   :  { %1712 = vmatpush3.bf16.msra.mxu1 %v1711_v13 }
 0xed7   :  { %1713 = vmatprep.subr.bf16.mxu1 %v2063_v5 }
 0xeda   :  { %v1872_v16 = vpop.eup %1871  ;;  %1715 = vmatpush3.bf16.msra.mxu1 %v1714_v19 }
 0xedb   :  { %v1209_v59 = vadd.f32 1.0, %v1872_v16  ;;  %v1874_v60 = vpop.eup %1873  ;;  %1716 = vmatprep.subr.bf16.mxu1 %v2063_v5 }
 0xedd   :  { %1875 = vrcp.f32 %v1209_v59 }
 0xede   :  { %1877 = vpow2.f32 %v1475_v21 }
 0xee7   :  { %v1876_v61 = vpop.eup %1875 }
 0xee8   :  { %v1224_v62 = vmul.f32 %v1876_v61, %v1874_v60  ;;  %v1878_v2 = vpop.eup %1877  ;;  %v1223_v26 = vmul.f32 %v1876_v61, %v1221_v24 }
 0xee9   :  { %v1216_v23 = vadd.f32 1.0, %v1878_v2 }
 0xeea   :  { %1226 = vrot.lane.b32.xlu0 %v1224_v62, %s2062_s4 }
 0xeeb   :  { %1879 = vrcp.f32 %v1216_v23 }
 0xef5   :  { %v1880_v10 = vpop.eup %1879 }
 0xf5c   :  { %v1227_v18 = vpop.permute.xlu0 %1226 }
 0xf5d   :  { %v1229_v4 = vadd.f32 %v1227_v18, %v1223_v26 }
 0xf5f   :  { %1881 = vtanh.f32 %v1229_v4 }
 0xf69   :  { %v1882_v20 = vpop.eup %1881 }
 0xf6a   :  { %v1231_v29 = vmul.f32 %v1882_v20, %v1880_v10 }
 0xf6c   :  { %1234 = vrot.lane.b32.xlu1 %v1231_v29, %s2062_s4 }
 0xfde   :  { %v1235_v34 = vpop.permute.xlu1 %1234 }
 0xfdf   :  { %v1237_v37 = vsel %vm1232_vm9, %v1235_v34, %v1121_v55 }
 0xfe0   :  { %1523 = vmatmul.mubr.msk.f32.vlgmr.msra.gmra.mrb[16].mxu1 %vm149_vm0, %v1237_v37 }
 0xfe1   :  { %1718 = vmatpush3.bf16.msra.mxu1 %v1717_v33  ;;  %1557 = vmatprep.mubr.msk.f32.mxu1 %vm2064_vm8, %v2061_v0  ;;  %v1337_v0 = vld [vmem:[#allocation12 + $0x50] sm:$0xff] }
 0xfe2   :  { %1719 = vmatprep.subr.bf16.mxu1 %v2063_v5  ;;  %v1732_v50 = vpack.c.bf16 %v1338_v46, %v1337_v0 }
 0xfe5   :  { %1721 = vmatpush3.bf16.msra.mxu1 %v1720_v40 }
 0xfe6   :  { %1722 = vmatprep.subr.bf16.mxu1 %v2063_v5 }
 0xfe9   :  { %1724 = vmatpush3.bf16.msra.mxu1 %v1723_v42 }
 0xfea   :  { %1725 = vmatprep.subr.bf16.mxu1 %v2063_v5 }
 0xfed   :  { %1727 = vmatpush3.bf16.msra.mxu1 %v1726_v38 }
 0xfee   :  { %1728 = vmatprep.subr.bf16.mxu1 %v2063_v5 }
 0xff1   :  { %1730 = vmatpush3.bf16.msra.mxu1 %v1729_v45 }
 0xff2   :  { %1731 = vmatprep.subr.bf16.mxu1 %v2063_v5 }
 0xff5   :  { %1733 = vmatpush3.bf16.msra.mxu1 %v1732_v50 }
 0xff6   :  { %1734 = vmatprep.subr.bf16.mxu1 %v2063_v5 }
 0xff9   :  { %1736 = vmatpush3.bf16.msra.mxu1 %v1735_v47 }
 0xffa   :  { %1737 = vmatprep.subr.bf16.mxu1 %v2063_v5 }
 0xffd   :  { %1739 = vmatpush3.bf16.msra.mxu1 %v1738_v49 }
0x10b3   :  { %v1322_v52 = vpop.f32.mrb[16].mxu1 }
0x10b4   :  { %v1323_v53 = vadd.f32 %v1476_v51, %v1322_v52  ;;  %v1524_v54 = vpop.f32.mrb[17].mxu1 }
0x10b6   :  { %v1326_v55 = vmax.f32 %v1323_v53, 0.0 }
0x10b8   :  { %1558 = vmatmul.mubr.f32.vlgmr.msra.gmra.mrb[18].mxu1 %v1326_v55 }
0x118b   :  { %v1416_v57 = vpop.f32.mrb[18].mxu1 }
0x118c   :  { %v1417_v14 = vadd.f32 %v1478_v6, %v1416_v57  ;;  %v1559_v58 = vpop.f32.mrb[19].mxu1 }
0x118e   :  { %v1479_v8 = vmul.f32 -1.442695, %v1417_v14 }
0x1190   :  { %1883 = vpow2.f32 %v1479_v8 }
0x119a   :  { %v1884_v16 = vpop.eup %1883 }
0x119b   :  { %v1423_v59 = vadd.f32 1.0, %v1884_v16 }
0x119d   :  { %1885 = vrcp.f32 %v1423_v59 }
0x11a7   :  { %v1886_v60 = vpop.eup %1885 }
0x11a8   :  { %1426 = vst [vmem:[#allocation14] sm:$0xff] %v1886_v60 }
0x11a9   :  { %2030 = shalt.err (!%p2027_p10)
}
0x11aa   :  { %s2031_s25 = scalar_lea.hbm %s2444_s9, 128 }
0x11ab   :  { %p2032_p11 = scmp.ne.s32.totalorder %s2444_s9, %s2031_s25  ;;  %p2035_p12 = scmp.lt.u32.totalorder %s2031_s25, %s2444_s9 }
0x11ad   :  { %p2037_p13 = pnand %p2035_p12, %p2032_p11 }
0x11af   :  { %2040 = shalt.err (!%p2037_p13)
}
0x11b0   :  { %1436 = dma.vmem_to_hbm [thread:$0]  %s1434_s21, 128, %s2444_s9, [#allocation5]  }
0x11b1   :  { %2049 = dma.done.wait [#allocation5], 128  }
0x11b2   :  { %2050 = vsyncadd [#allocation5], 4294967168 }
0x11b3   :  { %1440 = vsyncpa [#allocation4], 1 }
0x11b4   :  { %1441 = vsyncpa [#allocation7], 1 }
0x11b5   :  { %1442 = vsyncpa [#allocation10], 1 }
0x11b6   :  { %1443 = vsyncpa [#allocation13], 1 }
0x11b7   :  { %1444 = vsyncpa [#allocation5], 1 }

</bundles_post_ra>
